<compile_context>
chip_gen: v6e
topology: v6e:2x2x1
jax: 0.10.0
libtpu: 0.0.40
codegen_flags: <defaults>
</compile_context>

<pallas_src>
import jax
import jax.numpy as jnp
from jax import lax
from jax.experimental import pallas as pl
from jax.experimental.pallas import tpu as pltpu

HIDDEN = 512  # nn.Linear(512, 512) twice
# Contract last axis of x with last axis of W, W kept in PyTorch (out, in) layout.
_NT_DIMS = (((1,), (1,)), ((), ()))


def reaction_expert_kernel(x_ref, w1_ref, b1_ref, w2_ref, b2_ref, o_ref, h_ref):
    # x_ref: (tm, 512) compute dtype; w*_ref: (512, 512) (out, in); b*_ref: (1, 512) f32.
    x = x_ref[...]
    # fc1: MXU matmul with f32 accumulation, bias add in f32.
    h = lax.dot_general(x, w1_ref[...], dimension_numbers=_NT_DIMS,
                        preferred_element_type=jnp.float32) + b1_ref[...]
    # Stage the (tm, 512) intermediate through VMEM explicitly; also casts it to
    # the compute dtype (bf16 on the fast path) for the second MXU pass.
    h_ref[...] = h.astype(h_ref.dtype)
    # fc2: second MXU matmul, f32 accumulation, f32 bias add.
    y = lax.dot_general(h_ref[...], w2_ref[...], dimension_numbers=_NT_DIMS,
                        preferred_element_type=jnp.float32) + b2_ref[...]
    o_ref[...] = y.astype(o_ref.dtype)


def _choose_tm(M):
    """Pick a row tile: 256 for big batches, else split small batches into ~2
    grid steps (keeps both v7x TensorCores busy), 8-row aligned."""
    if M >= 2 * 256:
        return 256
    half = -(-M // 2)
    return max(8, ((half + 7) // 8) * 8)


def reaction_expert(x, w1, b1, w2, b2, *, tm=None, use_bf16=True):
    """fc2(fc1(x)), matching the PyTorch ReactionExpert module.

    x: (M, 512). w1, w2: (512, 512) in PyTorch (out, in) layout. b1, b2: (512,).
    use_bf16=True runs the two matmuls with bf16 inputs / f32 accumulation
    (MXU fast path on v6e/v7x); use_bf16=False is bit-faithful f32.
    """
    M, D = x.shape
    assert D == HIDDEN and w1.shape == (HIDDEN, HIDDEN) and w2.shape == (HIDDEN, HIDDEN)

    if tm is None:
        tm = _choose_tm(M)
    m_pad = pl.cdiv(M, tm) * tm
    x_in = x if m_pad == M else jnp.pad(x, ((0, m_pad - M), (0, 0)))

    compute_dtype = jnp.bfloat16 if use_bf16 else jnp.float32
    in_bytes = 2 if use_bf16 else 4
    x_in = x_in.astype(compute_dtype)
    w1c = w1.astype(compute_dtype)
    w2c = w2.astype(compute_dtype)
    b1r = b1.reshape(1, HIDDEN).astype(jnp.float32)
    b2r = b2.reshape(1, HIDDEN).astype(jnp.float32)

    cost = pl.CostEstimate(
        flops=4 * m_pad * HIDDEN * HIDDEN,  # two (m,512)x(512,512) GEMMs
        transcendentals=0,
        bytes_accessed=(m_pad * HIDDEN * (in_bytes + 4)           # x in + out f32
                        + 2 * HIDDEN * HIDDEN * in_bytes          # two weights
                        + 2 * HIDDEN * 4),                        # two biases
    )

    grid = (m_pad // tm,)
    out = pl.pallas_call(
        reaction_expert_kernel,
        out_shape=jax.ShapeDtypeStruct((m_pad, HIDDEN), x.dtype),
        grid_spec=pltpu.PrefetchScalarGridSpec(
            num_scalar_prefetch=0,
            grid=grid,
            in_specs=[
                pl.BlockSpec((tm, HIDDEN), lambda i: (i, 0)),       # x tile (streamed)
                pl.BlockSpec((HIDDEN, HIDDEN), lambda i: (0, 0)),   # W1 (resident, const idx)
                pl.BlockSpec((1, HIDDEN), lambda i: (0, 0)),        # b1
                pl.BlockSpec((HIDDEN, HIDDEN), lambda i: (0, 0)),   # W2 (resident, const idx)
                pl.BlockSpec((1, HIDDEN), lambda i: (0, 0)),        # b2
            ],
            out_specs=pl.BlockSpec((tm, HIDDEN), lambda i: (i, 0)),
            scratch_shapes=[pltpu.VMEM((tm, HIDDEN), compute_dtype)],  # fc1 intermediate
        ),
        compiler_params=pltpu.CompilerParams(
            dimension_semantics=("parallel",),
            vmem_limit_bytes=32 * 1024 * 1024,
        ),
        cost_estimate=cost,
    )(x_in, w1c, b1r, w2c, b2r)

    return out if m_pad == M else out[:M]


def _init_linear(key, out_features, in_features):
    # Deterministic PyTorch-style Kaiming-uniform init (synthetic; no checkpoint).
    kw, kb = jax.random.split(key)
    bound_w = 1.0 / (in_features ** 0.5)
    w = jax.random.uniform(kw, (out_features, in_features), jnp.float32,
                           minval=-bound_w, maxval=bound_w)
    b = jax.random.uniform(kb, (out_features,), jnp.float32,
                           minval=-bound_w, maxval=bound_w)
    return w, b


if __name__ == "__main__":
    key = jax.random.PRNGKey(0)
    kx1, kx2, k1, k2 = jax.random.split(key, 4)

    w1, b1 = _init_linear(k1, HIDDEN, HIDDEN)
    w2, b2 = _init_linear(k2, HIDDEN, HIDDEN)

    # 1) exact f32 path, ragged small batch (exercises padding + small-tile path)
    M_small = 12
    x_small = jax.random.normal(kx1, (M_small, HIDDEN), jnp.float32)
    out_f32 = jax.block_until_ready(
        reaction_expert(x_small, w1, b1, w2, b2, use_bf16=False))
    ref_small = (x_small @ w1.T + b1) @ w2.T + b2
    assert out_f32.shape == (M_small, HIDDEN)
    assert jnp.allclose(out_f32, ref_small, atol=1e-4, rtol=1e-4)

    # 2) bf16 fast path, bigger batch (exercises the 256-row tile / 2-step grid)
    M_big = 512
    x_big = jax.random.normal(kx2, (M_big, HIDDEN), jnp.float32)
    out_bf16 = jax.block_until_ready(
        reaction_expert(x_big, w1, b1, w2, b2, use_bf16=True))
    ref_big = (x_big @ w1.T + b1) @ w2.T + b2
    rel_err = jnp.max(jnp.abs(out_bf16 - ref_big)) / (jnp.max(jnp.abs(ref_big)) + 1e-6)
    assert out_bf16.shape == (M_big, HIDDEN)
    assert float(rel_err) < 5e-2  # bf16 inputs, f32 accumulation over K=512

    print("KERNEL_OK")
</pallas_src>

<mosaic_0001>
module attributes {stable_mosaic.version = 11 : i64} {
  func.func @reaction_expert_kernel(%arg0: i32, %arg1: memref<8x512xf32, #tpu.memory_space<vmem>>, %arg2: memref<512x512xf32, #tpu.memory_space<vmem>>, %arg3: memref<1x512xf32, #tpu.memory_space<vmem>>, %arg4: memref<512x512xf32, #tpu.memory_space<vmem>>, %arg5: memref<1x512xf32, #tpu.memory_space<vmem>>, %arg6: memref<8x512xf32, #tpu.memory_space<vmem>>, %arg7: memref<8x512xf32, #tpu.memory_space<vmem>>) attributes {dimension_semantics = [#tpu.dimension_semantics<parallel>], iteration_bounds = array<i64: 2>, scalar_prefetch = 0 : i64, scratch_operands = 1 : i64, tpu.core_type = #tpu.core_type<tc>, window_params = [{transform_indices = @transform_0, window_bounds = array<i64: 8, 512>}, {pipeline_mode = #tpu.pipeline_mode<synchronous>, transform_indices = @transform_1, window_bounds = array<i64: 512, 512>}, {pipeline_mode = #tpu.pipeline_mode<synchronous>, transform_indices = @transform_2, window_bounds = array<i64: 1, 512>}, {pipeline_mode = #tpu.pipeline_mode<synchronous>, transform_indices = @transform_3, window_bounds = array<i64: 512, 512>}, {pipeline_mode = #tpu.pipeline_mode<synchronous>, transform_indices = @transform_4, window_bounds = array<i64: 1, 512>}, {transform_indices = @transform_5, window_bounds = array<i64: 8, 512>}]} {
    %c0 = arith.constant 0 : index
    %c0_0 = arith.constant 0 : index
    %0 = vector.load %arg1[%c0, %c0_0] : memref<8x512xf32, #tpu.memory_space<vmem>>, vector<8x512xf32>
    %c0_1 = arith.constant 0 : index
    %c0_2 = arith.constant 0 : index
    %1 = vector.load %arg2[%c0_1, %c0_2] : memref<512x512xf32, #tpu.memory_space<vmem>>, vector<512x512xf32>
    %cst = arith.constant dense<0.000000e+00> : vector<8x512xf32>
    %2 = tpu.matmul %0, %1, %cst {dimension_numbers = #tpu.dot_dimension_numbers<[1], [1], [0], [0], [0, 0, 1, 0], [], []>} : vector<8x512xf32>, vector<512x512xf32>, vector<8x512xf32> -> vector<8x512xf32>
    %c0_3 = arith.constant 0 : index
    %c0_4 = arith.constant 0 : index
    %3 = vector.load %arg3[%c0_3, %c0_4] : memref<1x512xf32, #tpu.memory_space<vmem>>, vector<1x512xf32>
    %4 = vector.broadcast %3 : vector<1x512xf32> to vector<8x512xf32>
    %5 = arith.addf %2, %4 : vector<8x512xf32>
    %c0_5 = arith.constant 0 : index
    %c0_6 = arith.constant 0 : index
    %6 = vector.load %arg7[%c0_5, %c0_6] : memref<8x512xf32, #tpu.memory_space<vmem>>, vector<8x512xf32>
    tpu.vector_store %arg7[%c0_5, %c0_6], %5 {strides = array<i32>} : memref<8x512xf32, #tpu.memory_space<vmem>>, vector<8x512xf32>,
    %c0_7 = arith.constant 0 : index
    %c0_8 = arith.constant 0 : index
    %7 = vector.load %arg7[%c0_7, %c0_8] : memref<8x512xf32, #tpu.memory_space<vmem>>, vector<8x512xf32>
    %c0_9 = arith.constant 0 : index
    %c0_10 = arith.constant 0 : index
    %8 = vector.load %arg4[%c0_9, %c0_10] : memref<512x512xf32, #tpu.memory_space<vmem>>, vector<512x512xf32>
    %cst_11 = arith.constant dense<0.000000e+00> : vector<8x512xf32>
    %9 = tpu.matmul %7, %8, %cst_11 {dimension_numbers = #tpu.dot_dimension_numbers<[1], [1], [0], [0], [0, 0, 1, 0], [], []>} : vector<8x512xf32>, vector<512x512xf32>, vector<8x512xf32> -> vector<8x512xf32>
    %c0_12 = arith.constant 0 : index
    %c0_13 = arith.constant 0 : index
    %10 = vector.load %arg5[%c0_12, %c0_13] : memref<1x512xf32, #tpu.memory_space<vmem>>, vector<1x512xf32>
    %11 = vector.broadcast %10 : vector<1x512xf32> to vector<8x512xf32>
    %12 = arith.addf %9, %11 : vector<8x512xf32>
    %c0_14 = arith.constant 0 : index
    %c0_15 = arith.constant 0 : index
    %13 = vector.load %arg6[%c0_14, %c0_15] : memref<8x512xf32, #tpu.memory_space<vmem>>, vector<8x512xf32>
    tpu.vector_store %arg6[%c0_14, %c0_15], %12 {strides = array<i32>} : memref<8x512xf32, #tpu.memory_space<vmem>>, vector<8x512xf32>,
    return
  }
  func.func @transform_0(%arg0: i32) -> (i32, i32) {
    %c0_i32 = arith.constant 0 : i32
    %c0_i32_0 = arith.constant 0 : i32
    return %arg0, %c0_i32 : i32, i32
  }
  func.func @transform_1(%arg0: i32) -> (i32, i32) {
    %c0_i32 = arith.constant 0 : i32
    %c0_i32_0 = arith.constant 0 : i32
    %c0_i32_1 = arith.constant 0 : i32
    return %c0_i32, %c0_i32_0 : i32, i32
  }
  func.func @transform_2(%arg0: i32) -> (i32, i32) {
    %c0_i32 = arith.constant 0 : i32
    %c0_i32_0 = arith.constant 0 : i32
    %c0_i32_1 = arith.constant 0 : i32
    return %c0_i32, %c0_i32_0 : i32, i32
  }
  func.func @transform_3(%arg0: i32) -> (i32, i32) {
    %c0_i32 = arith.constant 0 : i32
    %c0_i32_0 = arith.constant 0 : i32
    %c0_i32_1 = arith.constant 0 : i32
    return %c0_i32, %c0_i32_0 : i32, i32
  }
  func.func @transform_4(%arg0: i32) -> (i32, i32) {
    %c0_i32 = arith.constant 0 : i32
    %c0_i32_0 = arith.constant 0 : i32
    %c0_i32_1 = arith.constant 0 : i32
    return %c0_i32, %c0_i32_0 : i32, i32
  }
  func.func @transform_5(%arg0: i32) -> (i32, i32) {
    %c0_i32 = arith.constant 0 : i32
    %c0_i32_0 = arith.constant 0 : i32
    return %arg0, %c0_i32 : i32, i32
  }
}

</mosaic_0001>

<bundles_post_ra>
// kernel: tpu_custom_call.1
= control target key start
LH: loop header
LB: loop body
LE: loop exit
PB: predicated region body
PF: predicated region fallthrough
CT: control target
= control target key end

     0   :  { %10 = vsyncpa [#allocation4], 0  ;;  %s2107_s0 = inlined_call_operand.hbm [shape: f32[16,512], index: 0, kind: input, shape index: {}]   ;;  %s2108_s1 = inlined_call_operand.hbm [shape: f32[512,512], index: 1, kind: input, shape index: {}]   ;;  %s2109_s2 = inlined_call_operand.hbm [shape: f32[1,512], index: 2, kind: input, shape index: {}]   ;;  %s2110_s3 = inlined_call_operand.hbm [shape: f32[512,512], index: 3, kind: input, shape index: {}]   ;;  %s2111_s4 = inlined_call_operand.vmem [shape: f32[1,512], index: 4, kind: input, shape index: {}]   ;;  %s2112_s5 = inlined_call_operand.hbm [shape: f32[16,512], index: 5, kind: output, shape index: {}]  }
   0x1   :  { %12 = vsyncpa [#allocation4 + $0x1], 0 }
   0x2   :  { %13 = vsyncpa [#allocation7], 0 }
   0x3   :  { %14 = vsyncpa [#allocation10], 0 }
   0x4   :  { %15 = vsyncpa [#allocation5], 0 }
   0x5   :  { %17 = vsyncpa [#allocation5 + $0x1], 0  ;;  %s1855_s18 = smov 0   ;;  %s1857_s19 = smov 0  }
   0x6   :  { %s1859_s20 = smov 0   ;;  %s1861_s21 = smov 0  }
   0x7 LB: > { %s1876_s22 = sadd.s32 4294967295, %s1816_s21   ;;  %s1537_s23 = sadd.s32 4294967294, %s1816_s21   ;;  %s1816_s21 = sphi %s1861_s21, %s2136_s21   ;;  %s1812_s20 = sphi %s1859_s20, %s2135_s20   ;;  %s1808_s19 = sphi %s1857_s19, %s2134_s19   ;;  %s1804_s18 = sphi %s1855_s18, %s2133_s18  }
   0x8   : > { %p43_p0 = scmp.ne.s32.totalorder %s1808_s19, %s1804_s18  ;;  %p2113_p1 = scmp.eq.s32.totalorder %s1876_s22, 0 }
   0x9   : > { %p157_p3 = scmp.eq.s32.totalorder %s1537_s23, 1  ;;  %p1538_p5 = scmp.ge.s32.totalorder %s1816_s21, 1 }
   0xa   : > { %p1885_p4 = por %p2113_p1, %p43_p0  ;;  %p164_p7 = scmp.lt.s32.totalorder %s1816_s21, 3 }
   0xb   : > { %p1890_p6 = por %p157_p3, %p43_p0  ;;  %s1818_s27 = smov [#allocation6]  }
   0xc   : > { %s2117_s24 = scalar_select %p1885_p4, 1, 0 }
   0xd   : > { %s2118_s25 = scalar_select %p1890_p6, 1, 0 }
   0xe   : > { %p1895_p8 = pnand %p1538_p5, %p164_p7  ;;  %s176_s28 = sshll.u32 %s1818_s27, 4  ;;  %s177_s28 = int_to_ptr.vmem [resolvable:$true] %s176_s28 }
   0xf   : > { %s1819_s30 = smov [#allocation8]   ;;  %s1820_s7 = smov [#allocation9]  }
  0x10   : > { %s2119_s26 = scalar_select %p1895_p8, 1, 0 }
  0x11   : > { %p1575_p9 = pneg %p1895_p8  ;;  %s190_s6 = sshll.u32 %s1819_s30, 4  ;;  %s191_s6 = int_to_ptr.vmem [resolvable:$true] %s190_s6 }
  0x12   : > { %s200_s8 = sshll.u32 %s1820_s7, 4  ;;  %s1649_s9 = scalar_lea.vmem %s177_s28, 32768  ;;  %s201_s8 = int_to_ptr.vmem [resolvable:$true] %s200_s8 }
  0x13   : > { %p1904_p11 = pnand %p1575_p9, %p2113_p1  ;;  %p1650_p13 = scmp.ne.s32.totalorder %s177_s28, %s1649_s9 }
  0x14   : > { %p1657_p5 = scmp.lt.s32.totalorder %s177_s28, %s177_s28  ;;  %p1658_p7 = scmp.lt.s32.totalorder %s1649_s9, %s1649_s9 }
  0x15   : > { %p1640_p12 = pneg %p1904_p11 }
  0x16   : > { %p1659_p9 = por %p1658_p7, %p1657_p5 }
  0x17   : > { %p1652_p0 = pnand %p1650_p13, %p1640_p12 }
  0x19   : > { %p1653_p3 = pneg %p1652_p0 }
  0x1b   : > { %p1660_p10 = pnand %p1659_p9, %p1653_p3 }
  0x1d   : > { %1663 = shalt.err (!%p1660_p10)
}
  0x1e   : > { %s1821_s10 = smov 512   ;;  %s1822_s11 = smov 32  }
  0x1f   : > { %1578 = dma.hbm_to_vmem [thread:$0]  (!%p1904_p11), %s2108_s1, 32768, %s177_s28, [#allocation7], %s1821_s10, %s1821_s10, %s1822_s11  }
  0x20   : > { %s1675_s14 = scalar_lea.vmem %s191_s6, 64  ;;  %p1683_p2 = scmp.lt.s32.totalorder %s191_s6, %s191_s6 }
  0x21   : > { %p1676_p1 = scmp.ne.s32.totalorder %s191_s6, %s1675_s14  ;;  %p1684_p6 = scmp.lt.s32.totalorder %s1675_s14, %s1675_s14 }
  0x23   : > { %p1678_p13 = pnand %p1676_p1, %p1640_p12  ;;  %p1685_p5 = por %p1684_p6, %p1683_p2 }
  0x25   : > { %p1679_p0 = pneg %p1678_p13 }
  0x27   : > { %p1686_p3 = pnand %p1685_p5, %p1679_p0 }
  0x29   : > { %1689 = shalt.err (!%p1686_p3)
}
  0x2a   : > { %1581 = dma.hbm_to_vmem [thread:$0]  (!%p1904_p11), %s2109_s2, 64, %s191_s6, [#allocation7]  }
  0x2b   : > { %s1701_s17 = scalar_lea.vmem %s201_s8, 32768  ;;  %p1709_p9 = scmp.lt.s32.totalorder %s201_s8, %s201_s8 }
  0x2c   : > { %p1702_p10 = scmp.ne.s32.totalorder %s201_s8, %s1701_s17  ;;  %p1710_p13 = scmp.lt.s32.totalorder %s1701_s17, %s1701_s17 }
  0x2e   : > { %p1704_p7 = pnand %p1702_p10, %p1640_p12  ;;  %p1711_p4 = por %p1710_p13, %p1709_p9 }
  0x30   : > { %p1705_p1 = pneg %p1704_p7 }
  0x32   : > { %p1712_p2 = pnand %p1711_p4, %p1705_p1 }
  0x34   : > { %1715 = shalt.err (!%p1712_p2)
}
  0x35   : > { %1584 = dma.hbm_to_vmem [thread:$0]  (!%p1904_p11), %s2110_s3, 32768, %s201_s8, [#allocation10], %s1821_s10, %s1821_s10, %s1822_s11  }
  0x36   : > { %s1935_s28 = sadd.s32 1, %s1816_s21   ;;  %s30_s29 = sadd.s32 1, %s1812_s20 }
  0x37   : > { %s27_s30 = ssub.s32 %s1816_s21, %s1935_s28  ;;  %p37_p6 = scmp.ne.s32.totalorder %s1812_s20, %s1808_s19 }
  0x38   : > { %p28_p4 = scmp.eq.s32.totalorder %s27_s30, 0  ;;  %p38_p12 = scmp.eq.s32.totalorder %s1816_s21, 0 }
  0x39   : > { %p1596_p0 = scmp.lt.s32.totalorder %s1816_s21, 2  ;;  %p2121_p3 = scmp.eq.s32.totalorder %s1876_s22, 1 }
  0x3a   : > { %s1945_s6 = scalar_select %p28_p4, %s1812_s20, %s30_s29  }
  0x3b   : > { %p39_p5 = por %p38_p12, %p37_p6  ;;  %p1949_p10 = por %p2121_p3, %p37_p6 }
  0x3c   : > { %s217_s9 = sand.u32 1, %s1812_s20   ;;  %s1557_s12 = sshll.u32 %s1816_s21, 9 }
  0x3d   : > { %s2122_s7 = scalar_select %p1949_p10, 1, 0 }
  0x3e   : > { %s1543_s8 = sshll.u32 %s217_s9, 5  ;;  %s1958_s13 = scalar_lea.hbm %s2107_s0, %s1557_s12 }
  0x3f   : > { %s221_s14 = scalar_lea.vmem [#allocation3], %s1543_s8  ;;  %p1960_p11 = pnand %p1596_p0, %p39_p5 }
  0x40   : > { %s229_s15 = sshll.u32 %s221_s14, 4  ;;  %s218_s17 = scalar_lea.sflag [#allocation4], %s217_s9  ;;  %s230_s15 = int_to_ptr.vmem [resolvable:$true] %s229_s15 }
  0x41   : > { %s1716_s23 = scalar_lea.hbm %s1958_s13, 512  ;;  %p1718_p1 = pneg %p1960_p11 }
  0x42   : > { %p1717_p7 = scmp.ne.s32.totalorder %s1958_s13, %s1716_s23  ;;  %s1721_s29 = scalar_lea.hbm %s2107_s0, 1024 }
  0x43   : > { %p1722_p2 = scmp.lt.s32.totalorder %s1958_s13, %s2107_s0  ;;  %p1723_p4 = scmp.lt.s32.totalorder %s1721_s29, %s1716_s23 }
  0x44   : > { %p1719_p9 = pnand %p1718_p1, %p1717_p7 }
  0x45   : > { %p1724_p6 = por %p1723_p4, %p1722_p2 }
  0x46   : > { %p1720_p13 = pneg %p1719_p9 }
  0x48   : > { %p1725_p12 = pnand %p1724_p6, %p1720_p13 }
  0x4a   : > { %1728 = shalt.err (!%p1725_p12)
}
  0x4b   : > { %s1729_s10 = scalar_lea.vmem %s230_s15, 512  ;;  %s1823_s9 = smov [#allocation3]  }
  0x4c   : > { %p1730_p0 = scmp.ne.s32.totalorder %s230_s15, %s1729_s10  ;;  %s1734_s11 = sshll.u32 %s1823_s9, 4  ;;  %s1735_s11 = int_to_ptr.vmem [resolvable:$false] %s1734_s11 }
  0x4d   : > { %s1736_s14 = scalar_lea.vmem %s1735_s11, 1024  ;;  %p1737_p7 = scmp.lt.s32.totalorder %s230_s15, %s1735_s11 }
  0x4e   : > { %p1732_p5 = pnand %p1730_p0, %p1718_p1  ;;  %p1738_p9 = scmp.lt.s32.totalorder %s1736_s14, %s1729_s10 }
  0x50   : > { %p1733_p3 = pneg %p1732_p5  ;;  %p1739_p10 = por %p1738_p9, %p1737_p7 }
  0x52   : > { %p1740_p8 = pnand %p1739_p10, %p1733_p3 }
  0x54   : > { %1743 = shalt.err (!%p1740_p8)
}
  0x55   : > { %1588 = dma.hbm_to_vmem [thread:$0]  (!%p1960_p11), %s1958_s13, 512, %s230_s15, %s218_s17  }
  0x56   : > { %p2124_p13 = scmp.ne.s32.totalorder %s2119_s26, 0 }
  0x57   : > { %s1981_s23 = sand.u32 (!%p2124_p13), 1, %s1808_s19   ;;  %p2125_p8 = scmp.ne.s32.totalorder (!%p2124_p13), %s2117_s24, 0 }
  0x58   : > { %238 = sbr.rel (%p2124_p13) target bundleno = 895 (0x37f), region = 40  ;;  %s1547_s27 = sshll.u32 (!%p2124_p13), %s1981_s23, 5 }
  0x59   : > { %s241_s30 = scalar_lea.sflag (!%p2124_p13), [#allocation4], %s1981_s23  ;;  %s1987_s29 = scalar_lea.vmem (!%p2124_p13), [#allocation3], %s1547_s27 }
  0x5d   : > { %1787 = dma.done.wait (%p2125_p8), %s241_s30, 512  }
  0x5e   : > { %1789 = vsyncadd (%p2125_p8), %s241_s30, 4294966784  ;;  %p2126_p10 = scmp.eq.s32.totalorder %s1876_s22, 0 }
  0x60   : > { %1791 = dma.done.wait (%p2126_p10), [#allocation7], 32832   ;;  %p2127_p11 = pmov %p2126_p10 }
  0x61   : > { %p2128_p1 = pmov %p2126_p10 }
  0x62   : > { %1793 = vsyncadd (%p2127_p11), [#allocation7], 4294934464 }
  0x63   : > { %1795 = dma.done.wait (%p2128_p1), [#allocation10], 32768   ;;  %p2129_p2 = pmov %p2128_p1 }
  0x64   : > { %v348_v0 = vld [vmem:[#allocation6 + $0x1e8] sm:$0xff]  ;;  %v350_v1 = vld [vmem:[#allocation6 + $0x1f8] sm:$0xff]  ;;  %v347_v2 = vld [vmem:[#allocation6 + $0x1e0] sm:$0xff]  ;;  %s282_s13 = scalar_lea.vmem [#allocation11], %s1547_s27  ;;  %s1558_s15 = sshll.u32 %s1876_s22, 9 }
  0x65   : > { %1797 = vsyncadd (%p2129_p2), [#allocation10], 4294934528  ;;  %565 = vmatprep.subr.mxu0 %v348_v0  ;;  %636 = vmatprep.subr.mxu1 %v350_v1  ;;  %v349_v3 = vld [vmem:[#allocation6 + $0x1f0] sm:$0xff]  ;;  %v344_v4 = vld [vmem:[#allocation6 + $0x1c8] sm:$0xff]  ;;  %s1438_s16 = sshll.u32 %s282_s13, 4  ;;  %s1436_s8 = scalar_lea.hbm %s2112_s5, %s1558_s15  ;;  %s1439_s16 = int_to_ptr.vmem [resolvable:$true] %s1438_s16 }
  0x66   : > { %v346_v5 = vld [vmem:[#allocation6 + $0x1d8] sm:$0xff]  ;;  %566 = vmatpush1.xpose.msra.mxu0 %v347_v2  ;;  %637 = vmatpush1.xpose.msra.mxu1 %v349_v3  ;;  %v343_v6 = vld [vmem:[#allocation6 + $0x1c0] sm:$0xff]  ;;  %v345_v7 = vld [vmem:[#allocation6 + $0x1d0] sm:$0xff]  ;;  %s1424_s10 = scalar_lea.sflag [#allocation5], %s1981_s23  ;;  %s1744_s9 = scalar_lea.vmem %s1439_s16, 512 }
  0x67   : > { %567 = vmatprep.subr.mxu0 %v344_v4  ;;  %638 = vmatprep.subr.mxu1 %v346_v5  ;;  %v340_v8 = vld [vmem:[#allocation6 + $0x1a8] sm:$0xff]  ;;  %v342_v9 = vld [vmem:[#allocation6 + $0x1b8] sm:$0xff]  ;;  %v339_v10 = vld [vmem:[#allocation6 + $0x1a0] sm:$0xff]  ;;  %p1745_p4 = scmp.ne.s32.totalorder %s1439_s16, %s1744_s9  ;;  %p2130_p6 = scmp.ne.s32.totalorder %s2122_s7, 0 }
  0x68   : > { %v341_v11 = vld [vmem:[#allocation6 + $0x1b0] sm:$0xff]  ;;  %v336_v12 = vld [vmem:[#allocation6 + $0x188] sm:$0xff]  ;;  %v338_v13 = vld [vmem:[#allocation6 + $0x198] sm:$0xff]  ;;  %s1824_s11 = smov [#allocation11]  }
  0x69   : > { %v335_v14 = vld [vmem:[#allocation6 + $0x180] sm:$0xff]  ;;  %v337_v15 = vld [vmem:[#allocation6 + $0x190] sm:$0xff]  ;;  %v332_v16 = vld [vmem:[#allocation6 + $0x168] sm:$0xff]  ;;  %p1746_p12 = pnand %p1745_p4, %p2130_p6  ;;  %s1748_s22 = sshll.u32 %s1824_s11, 4  ;;  %s1749_s22 = int_to_ptr.vmem [resolvable:$false] %s1748_s22 }
  0x6a   : > { %568 = vmatpush1.xpose.msra.mxu0 %v343_v6  ;;  %639 = vmatpush1.xpose.msra.mxu1 %v345_v7  ;;  %v334_v17 = vld [vmem:[#allocation6 + $0x178] sm:$0xff]  ;;  %v331_v18 = vld [vmem:[#allocation6 + $0x160] sm:$0xff]  ;;  %v333_v19 = vld [vmem:[#allocation6 + $0x170] sm:$0xff]  ;;  %s1750_s14 = scalar_lea.vmem %s1749_s22, 1024  ;;  %p1751_p5 = scmp.lt.s32.totalorder %s1439_s16, %s1749_s22 }
  0x6b   : > { %569 = vmatprep.subr.mxu0 %v340_v8  ;;  %640 = vmatprep.subr.mxu1 %v342_v9  ;;  %v328_v20 = vld [vmem:[#allocation6 + $0x148] sm:$0xff]  ;;  %v330_v21 = vld [vmem:[#allocation6 + $0x158] sm:$0xff]  ;;  %v327_v22 = vld [vmem:[#allocation6 + $0x140] sm:$0xff]  ;;  %p1747_p0 = pneg %p1746_p12  ;;  %p1752_p3 = scmp.lt.s32.totalorder %s1750_s14, %s1744_s9 }
  0x6c   : > { %v329_v23 = vld [vmem:[#allocation6 + $0x150] sm:$0xff]  ;;  %v324_v24 = vld [vmem:[#allocation6 + $0x128] sm:$0xff]  ;;  %v326_v25 = vld [vmem:[#allocation6 + $0x138] sm:$0xff] }
  0x6d   : > { %v323_v26 = vld [vmem:[#allocation6 + $0x120] sm:$0xff]  ;;  %v325_v27 = vld [vmem:[#allocation6 + $0x130] sm:$0xff]  ;;  %v320_v28 = vld [vmem:[#allocation6 + $0x108] sm:$0xff]  ;;  %p1753_p7 = por %p1752_p3, %p1751_p5 }
  0x6e   : > { %570 = vmatpush1.xpose.msra.mxu0 %v339_v10  ;;  %641 = vmatpush1.xpose.msra.mxu1 %v341_v11  ;;  %v322_v29 = vld [vmem:[#allocation6 + $0x118] sm:$0xff]  ;;  %v319_v30 = vld [vmem:[#allocation6 + $0x100] sm:$0xff]  ;;  %v321_v31 = vld [vmem:[#allocation6 + $0x110] sm:$0xff] }
  0x6f   : > { %571 = vmatprep.subr.mxu0 %v336_v12  ;;  %642 = vmatprep.subr.mxu1 %v338_v13  ;;  %v316_v32 = vld [vmem:[#allocation6 + $0xe8] sm:$0xff]  ;;  %v318_v33 = vld [vmem:[#allocation6 + $0xf8] sm:$0xff]  ;;  %v315_v34 = vld [vmem:[#allocation6 + $0xe0] sm:$0xff]  ;;  %p1754_p9 = pnand %p1753_p7, %p1747_p0 }
  0x70   : > { %v317_v35 = vld [vmem:[#allocation6 + $0xf0] sm:$0xff]  ;;  %v312_v36 = vld [vmem:[#allocation6 + $0xc8] sm:$0xff]  ;;  %v314_v37 = vld [vmem:[#allocation6 + $0xd8] sm:$0xff] }
  0x71   : > { %v311_v38 = vld [vmem:[#allocation6 + $0xc0] sm:$0xff]  ;;  %v313_v39 = vld [vmem:[#allocation6 + $0xd0] sm:$0xff]  ;;  %v308_v40 = vld [vmem:[#allocation6 + $0xa8] sm:$0xff] }
  0x72   : > { %572 = vmatpush1.xpose.msra.mxu0 %v335_v14  ;;  %643 = vmatpush1.xpose.msra.mxu1 %v337_v15  ;;  %v310_v41 = vld [vmem:[#allocation6 + $0xb8] sm:$0xff]  ;;  %v307_v42 = vld [vmem:[#allocation6 + $0xa0] sm:$0xff]  ;;  %v309_v43 = vld [vmem:[#allocation6 + $0xb0] sm:$0xff] }
  0x73   : > { %573 = vmatprep.subr.mxu0 %v332_v16  ;;  %644 = vmatprep.subr.mxu1 %v334_v17  ;;  %v304_v44 = vld [vmem:[#allocation6 + $0x88] sm:$0xff]  ;;  %v306_v45 = vld [vmem:[#allocation6 + $0x98] sm:$0xff]  ;;  %v303_v47 = vld [vmem:[#allocation6 + $0x80] sm:$0xff] }
  0x74   : > { %v2002_v46 = vld [vmem:[%s1987_s29 + $0x8] sm:$0xff]  ;;  %v305_v48 = vld [vmem:[#allocation6 + $0x90] sm:$0xff]  ;;  %v2005_v49 = vld [vmem:[%s1987_s29 + $0x18] sm:$0xff] }
  0x75   : > { %v300_v50 = vld [vmem:[#allocation6 + $0x68] sm:$0xff]  ;;  %v302_v51 = vld [vmem:[#allocation6 + $0x78] sm:$0xff]  ;;  %629 = vmatprep.mubr.f32.mxu0 %v2002_v46  ;;  %700 = vmatprep.mubr.f32.mxu1 %v2005_v49  ;;  %v299_v52 = vld [vmem:[#allocation6 + $0x60] sm:$0xff] }
  0x76   : > { %574 = vmatpush1.xpose.msra.mxu0 %v331_v18  ;;  %645 = vmatpush1.xpose.msra.mxu1 %v333_v19  ;;  %v301_v53 = vld [vmem:[#allocation6 + $0x70] sm:$0xff]  ;;  %v296_v54 = vld [vmem:[#allocation6 + $0x48] sm:$0xff]  ;;  %v298_v55 = vld [vmem:[#allocation6 + $0x58] sm:$0xff] }
  0x77   : > { %575 = vmatprep.subr.mxu0 %v328_v20  ;;  %646 = vmatprep.subr.mxu1 %v330_v21  ;;  %v295_v56 = vld [vmem:[#allocation6 + $0x40] sm:$0xff]  ;;  %v297_v57 = vld [vmem:[#allocation6 + $0x50] sm:$0xff]  ;;  %v292_v58 = vld [vmem:[#allocation6 + $0x28] sm:$0xff] }
  0x78   : > { %v294_v59 = vld [vmem:[#allocation6 + $0x38] sm:$0xff]  ;;  %v291_v60 = vld [vmem:[#allocation6 + $0x20] sm:$0xff]  ;;  %v293_v61 = vld [vmem:[#allocation6 + $0x30] sm:$0xff] }
  0x79   : > { %v288_v62 = vld [vmem:[#allocation6 + $0x8] sm:$0xff]  ;;  %v290_v63 = vld [vmem:[#allocation6 + $0x18] sm:$0xff]  ;;  %v287_v0 = vld [vmem:[#allocation6] sm:$0xff] }
  0x7a   : > { %576 = vmatpush1.xpose.msra.mxu0 %v327_v22  ;;  %647 = vmatpush1.xpose.msra.mxu1 %v329_v23  ;;  %v289_v1 = vld [vmem:[#allocation6 + $0x10] sm:$0xff]  ;;  %v412_v2 = vld [vmem:[#allocation6 + $0x3e8] sm:$0xff]  ;;  %v414_v3 = vld [vmem:[#allocation6 + $0x3f8] sm:$0xff] }
  0x7b   : > { %577 = vmatprep.subr.mxu0 %v324_v24  ;;  %648 = vmatprep.subr.mxu1 %v326_v25  ;;  %v411_v4 = vld [vmem:[#allocation6 + $0x3e0] sm:$0xff]  ;;  %v413_v5 = vld [vmem:[#allocation6 + $0x3f0] sm:$0xff]  ;;  %v408_v6 = vld [vmem:[#allocation6 + $0x3c8] sm:$0xff] }
  0x7c   : > { %v410_v7 = vld [vmem:[#allocation6 + $0x3d8] sm:$0xff]  ;;  %v407_v8 = vld [vmem:[#allocation6 + $0x3c0] sm:$0xff]  ;;  %v409_v9 = vld [vmem:[#allocation6 + $0x3d0] sm:$0xff] }
  0x7d   : > { %v404_v10 = vld [vmem:[#allocation6 + $0x3a8] sm:$0xff]  ;;  %v406_v11 = vld [vmem:[#allocation6 + $0x3b8] sm:$0xff]  ;;  %v403_v12 = vld [vmem:[#allocation6 + $0x3a0] sm:$0xff] }
  0x7e   : > { %578 = vmatpush1.xpose.msra.mxu0 %v323_v26  ;;  %649 = vmatpush1.xpose.msra.mxu1 %v325_v27  ;;  %v405_v13 = vld [vmem:[#allocation6 + $0x3b0] sm:$0xff]  ;;  %v400_v14 = vld [vmem:[#allocation6 + $0x388] sm:$0xff]  ;;  %v402_v15 = vld [vmem:[#allocation6 + $0x398] sm:$0xff] }
  0x7f   : > { %579 = vmatprep.subr.mxu0 %v320_v28  ;;  %650 = vmatprep.subr.mxu1 %v322_v29  ;;  %v399_v16 = vld [vmem:[#allocation6 + $0x380] sm:$0xff]  ;;  %v401_v17 = vld [vmem:[#allocation6 + $0x390] sm:$0xff]  ;;  %v396_v18 = vld [vmem:[#allocation6 + $0x368] sm:$0xff] }
  0x80   : > { %v398_v19 = vld [vmem:[#allocation6 + $0x378] sm:$0xff]  ;;  %v395_v20 = vld [vmem:[#allocation6 + $0x360] sm:$0xff]  ;;  %v397_v21 = vld [vmem:[#allocation6 + $0x370] sm:$0xff] }
  0x81   : > { %v392_v22 = vld [vmem:[#allocation6 + $0x348] sm:$0xff]  ;;  %v394_v23 = vld [vmem:[#allocation6 + $0x358] sm:$0xff]  ;;  %v391_v24 = vld [vmem:[#allocation6 + $0x340] sm:$0xff] }
  0x82   : > { %580 = vmatpush1.xpose.msra.mxu0 %v319_v30  ;;  %651 = vmatpush1.xpose.msra.mxu1 %v321_v31  ;;  %v393_v25 = vld [vmem:[#allocation6 + $0x350] sm:$0xff]  ;;  %v388_v26 = vld [vmem:[#allocation6 + $0x328] sm:$0xff]  ;;  %v390_v27 = vld [vmem:[#allocation6 + $0x338] sm:$0xff] }
  0x83   : > { %581 = vmatprep.subr.mxu0 %v316_v32  ;;  %652 = vmatprep.subr.mxu1 %v318_v33  ;;  %v387_v28 = vld [vmem:[#allocation6 + $0x320] sm:$0xff]  ;;  %v389_v29 = vld [vmem:[#allocation6 + $0x330] sm:$0xff]  ;;  %v384_v30 = vld [vmem:[#allocation6 + $0x308] sm:$0xff] }
  0x84   : > { %v386_v31 = vld [vmem:[#allocation6 + $0x318] sm:$0xff]  ;;  %v383_v32 = vld [vmem:[#allocation6 + $0x300] sm:$0xff]  ;;  %v385_v33 = vld [vmem:[#allocation6 + $0x310] sm:$0xff] }
  0x86   : > { %582 = vmatpush1.xpose.msra.mxu0 %v315_v34  ;;  %653 = vmatpush1.xpose.msra.mxu1 %v317_v35  ;;  %v380_v34 = vld [vmem:[#allocation6 + $0x2e8] sm:$0xff]  ;;  %v382_v35 = vld [vmem:[#allocation6 + $0x2f8] sm:$0xff] }
  0x87   : > { %583 = vmatprep.subr.mxu0 %v312_v36  ;;  %654 = vmatprep.subr.mxu1 %v314_v37  ;;  %v379_v36 = vld [vmem:[#allocation6 + $0x2e0] sm:$0xff]  ;;  %v381_v37 = vld [vmem:[#allocation6 + $0x2f0] sm:$0xff] }
  0x8a   : > { %584 = vmatpush1.xpose.msra.mxu0 %v311_v38  ;;  %655 = vmatpush1.xpose.msra.mxu1 %v313_v39  ;;  %v376_v38 = vld [vmem:[#allocation6 + $0x2c8] sm:$0xff]  ;;  %v378_v39 = vld [vmem:[#allocation6 + $0x2d8] sm:$0xff] }
  0x8b   : > { %585 = vmatprep.subr.mxu0 %v308_v40  ;;  %656 = vmatprep.subr.mxu1 %v310_v41  ;;  %v375_v40 = vld [vmem:[#allocation6 + $0x2c0] sm:$0xff]  ;;  %v377_v41 = vld [vmem:[#allocation6 + $0x2d0] sm:$0xff] }
  0x8e   : > { %586 = vmatpush1.xpose.msra.mxu0 %v307_v42  ;;  %657 = vmatpush1.xpose.msra.mxu1 %v309_v43  ;;  %v372_v42 = vld [vmem:[#allocation6 + $0x2a8] sm:$0xff]  ;;  %v374_v43 = vld [vmem:[#allocation6 + $0x2b8] sm:$0xff] }
  0x8f   : > { %587 = vmatprep.subr.mxu0 %v304_v44  ;;  %658 = vmatprep.subr.mxu1 %v306_v45  ;;  %v371_v44 = vld [vmem:[#allocation6 + $0x2a0] sm:$0xff]  ;;  %v373_v45 = vld [vmem:[#allocation6 + $0x2b0] sm:$0xff] }
  0x92   : > { %588 = vmatpush1.xpose.msra.mxu0 %v303_v47  ;;  %659 = vmatpush1.xpose.msra.mxu1 %v305_v48  ;;  %v368_v47 = vld [vmem:[#allocation6 + $0x288] sm:$0xff]  ;;  %v370_v48 = vld [vmem:[#allocation6 + $0x298] sm:$0xff] }
  0x93   : > { %589 = vmatprep.subr.mxu0 %v300_v50  ;;  %660 = vmatprep.subr.mxu1 %v302_v51  ;;  %v367_v50 = vld [vmem:[#allocation6 + $0x280] sm:$0xff]  ;;  %v369_v51 = vld [vmem:[#allocation6 + $0x290] sm:$0xff] }
  0x96   : > { %590 = vmatpush1.xpose.msra.mxu0 %v299_v52  ;;  %661 = vmatpush1.xpose.msra.mxu1 %v301_v53  ;;  %v364_v52 = vld [vmem:[#allocation6 + $0x268] sm:$0xff]  ;;  %v366_v53 = vld [vmem:[#allocation6 + $0x278] sm:$0xff] }
  0x97   : > { %591 = vmatprep.subr.mxu0 %v296_v54  ;;  %662 = vmatprep.subr.mxu1 %v298_v55  ;;  %v363_v54 = vld [vmem:[#allocation6 + $0x260] sm:$0xff]  ;;  %v365_v55 = vld [vmem:[#allocation6 + $0x270] sm:$0xff] }
  0x9a   : > { %592 = vmatpush1.xpose.msra.mxu0 %v295_v56  ;;  %663 = vmatpush1.xpose.msra.mxu1 %v297_v57  ;;  %v360_v56 = vld [vmem:[#allocation6 + $0x248] sm:$0xff]  ;;  %v362_v57 = vld [vmem:[#allocation6 + $0x258] sm:$0xff] }
  0x9b   : > { %593 = vmatprep.subr.mxu0 %v292_v58  ;;  %664 = vmatprep.subr.mxu1 %v294_v59  ;;  %v359_v58 = vld [vmem:[#allocation6 + $0x240] sm:$0xff]  ;;  %v361_v59 = vld [vmem:[#allocation6 + $0x250] sm:$0xff] }
  0x9e   : > { %594 = vmatpush1.xpose.msra.mxu0 %v291_v60  ;;  %665 = vmatpush1.xpose.msra.mxu1 %v293_v61  ;;  %v356_v60 = vld [vmem:[#allocation6 + $0x228] sm:$0xff]  ;;  %v358_v61 = vld [vmem:[#allocation6 + $0x238] sm:$0xff] }
  0x9f   : > { %595 = vmatprep.subr.mxu0 %v288_v62  ;;  %666 = vmatprep.subr.mxu1 %v290_v63  ;;  %v355_v62 = vld [vmem:[#allocation6 + $0x220] sm:$0xff]  ;;  %v357_v63 = vld [vmem:[#allocation6 + $0x230] sm:$0xff] }
  0xa2   : > { %596 = vmatpush1.xpose.msra.mxu0 %v287_v0  ;;  %667 = vmatpush1.xpose.msra.mxu1 %v289_v1  ;;  %v352_v0 = vld [vmem:[#allocation6 + $0x208] sm:$0xff]  ;;  %v354_v1 = vld [vmem:[#allocation6 + $0x218] sm:$0xff] }
  0xa3   : > { %597 = vmatprep.subr.mxu0 %v412_v2  ;;  %668 = vmatprep.subr.mxu1 %v414_v3  ;;  %v351_v2 = vld [vmem:[#allocation6 + $0x200] sm:$0xff]  ;;  %v353_v3 = vld [vmem:[#allocation6 + $0x210] sm:$0xff] }
  0xa6   : > { %598 = vmatpush2.xpose.msra.mxu0 %v411_v4  ;;  %669 = vmatpush2.xpose.msra.mxu1 %v413_v5  ;;  %v476_v4 = vld [vmem:[#allocation6 + $0x5e8] sm:$0xff]  ;;  %v478_v5 = vld [vmem:[#allocation6 + $0x5f8] sm:$0xff] }
  0xa7   : > { %599 = vmatprep.subr.mxu0 %v408_v6  ;;  %670 = vmatprep.subr.mxu1 %v410_v7  ;;  %v2010_v6 = vld [vmem:[%s1987_s29] sm:$0xff]  ;;  %v2013_v7 = vld [vmem:[%s1987_s29 + $0x10] sm:$0xff] }
  0xaa   : > { %600 = vmatpush2.xpose.msra.mxu0 %v407_v8  ;;  %671 = vmatpush2.xpose.msra.mxu1 %v409_v9  ;;  %v475_v8 = vld [vmem:[#allocation6 + $0x5e0] sm:$0xff]  ;;  %v477_v9 = vld [vmem:[#allocation6 + $0x5f0] sm:$0xff] }
  0xab   : > { %601 = vmatprep.subr.mxu0 %v404_v10  ;;  %672 = vmatprep.subr.mxu1 %v406_v11  ;;  %v472_v10 = vld [vmem:[#allocation6 + $0x5c8] sm:$0xff]  ;;  %v474_v11 = vld [vmem:[#allocation6 + $0x5d8] sm:$0xff] }
  0xae   : > { %602 = vmatpush2.xpose.msra.mxu0 %v403_v12  ;;  %673 = vmatpush2.xpose.msra.mxu1 %v405_v13  ;;  %v471_v12 = vld [vmem:[#allocation6 + $0x5c0] sm:$0xff]  ;;  %v473_v13 = vld [vmem:[#allocation6 + $0x5d0] sm:$0xff] }
  0xaf   : > { %603 = vmatprep.subr.mxu0 %v400_v14  ;;  %674 = vmatprep.subr.mxu1 %v402_v15  ;;  %v468_v14 = vld [vmem:[#allocation6 + $0x5a8] sm:$0xff]  ;;  %v470_v15 = vld [vmem:[#allocation6 + $0x5b8] sm:$0xff] }
  0xb2   : > { %604 = vmatpush2.xpose.msra.mxu0 %v399_v16  ;;  %675 = vmatpush2.xpose.msra.mxu1 %v401_v17  ;;  %v467_v16 = vld [vmem:[#allocation6 + $0x5a0] sm:$0xff]  ;;  %v469_v17 = vld [vmem:[#allocation6 + $0x5b0] sm:$0xff] }
  0xb3   : > { %605 = vmatprep.subr.mxu0 %v396_v18  ;;  %676 = vmatprep.subr.mxu1 %v398_v19  ;;  %v464_v18 = vld [vmem:[#allocation6 + $0x588] sm:$0xff]  ;;  %v466_v19 = vld [vmem:[#allocation6 + $0x598] sm:$0xff] }
  0xb6   : > { %606 = vmatpush2.xpose.msra.mxu0 %v395_v20  ;;  %677 = vmatpush2.xpose.msra.mxu1 %v397_v21  ;;  %v463_v20 = vld [vmem:[#allocation6 + $0x580] sm:$0xff]  ;;  %v465_v21 = vld [vmem:[#allocation6 + $0x590] sm:$0xff] }
  0xb7   : > { %607 = vmatprep.subr.mxu0 %v392_v22  ;;  %678 = vmatprep.subr.mxu1 %v394_v23  ;;  %v460_v22 = vld [vmem:[#allocation6 + $0x568] sm:$0xff]  ;;  %v462_v23 = vld [vmem:[#allocation6 + $0x578] sm:$0xff] }
  0xba   : > { %608 = vmatpush2.xpose.msra.mxu0 %v391_v24  ;;  %679 = vmatpush2.xpose.msra.mxu1 %v393_v25  ;;  %v456_v24 = vld [vmem:[#allocation6 + $0x548] sm:$0xff]  ;;  %v458_v25 = vld [vmem:[#allocation6 + $0x558] sm:$0xff] }
  0xbb   : > { %609 = vmatprep.subr.mxu0 %v388_v26  ;;  %680 = vmatprep.subr.mxu1 %v390_v27  ;;  %v455_v26 = vld [vmem:[#allocation6 + $0x540] sm:$0xff]  ;;  %v457_v27 = vld [vmem:[#allocation6 + $0x550] sm:$0xff] }
  0xbe   : > { %610 = vmatpush2.xpose.msra.mxu0 %v387_v28  ;;  %681 = vmatpush2.xpose.msra.mxu1 %v389_v29  ;;  %v452_v28 = vld [vmem:[#allocation6 + $0x528] sm:$0xff]  ;;  %v454_v29 = vld [vmem:[#allocation6 + $0x538] sm:$0xff] }
  0xbf   : > { %611 = vmatprep.subr.mxu0 %v384_v30  ;;  %682 = vmatprep.subr.mxu1 %v386_v31  ;;  %v451_v30 = vld [vmem:[#allocation6 + $0x520] sm:$0xff]  ;;  %v453_v31 = vld [vmem:[#allocation6 + $0x530] sm:$0xff] }
  0xc2   : > { %612 = vmatpush2.xpose.msra.mxu0 %v383_v32  ;;  %683 = vmatpush2.xpose.msra.mxu1 %v385_v33  ;;  %v448_v32 = vld [vmem:[#allocation6 + $0x508] sm:$0xff]  ;;  %v450_v33 = vld [vmem:[#allocation6 + $0x518] sm:$0xff] }
  0xc3   : > { %613 = vmatprep.subr.mxu0 %v380_v34  ;;  %684 = vmatprep.subr.mxu1 %v382_v35  ;;  %v447_v34 = vld [vmem:[#allocation6 + $0x500] sm:$0xff]  ;;  %v449_v35 = vld [vmem:[#allocation6 + $0x510] sm:$0xff] }
  0xc6   : > { %614 = vmatpush2.xpose.msra.mxu0 %v379_v36  ;;  %685 = vmatpush2.xpose.msra.mxu1 %v381_v37  ;;  %v444_v36 = vld [vmem:[#allocation6 + $0x4e8] sm:$0xff]  ;;  %v446_v37 = vld [vmem:[#allocation6 + $0x4f8] sm:$0xff] }
  0xc7   : > { %615 = vmatprep.subr.mxu0 %v376_v38  ;;  %686 = vmatprep.subr.mxu1 %v378_v39  ;;  %v443_v38 = vld [vmem:[#allocation6 + $0x4e0] sm:$0xff]  ;;  %v445_v39 = vld [vmem:[#allocation6 + $0x4f0] sm:$0xff] }
  0xca   : > { %616 = vmatpush2.xpose.msra.mxu0 %v375_v40  ;;  %687 = vmatpush2.xpose.msra.mxu1 %v377_v41  ;;  %v440_v40 = vld [vmem:[#allocation6 + $0x4c8] sm:$0xff]  ;;  %v442_v41 = vld [vmem:[#allocation6 + $0x4d8] sm:$0xff] }
  0xcb   : > { %617 = vmatprep.subr.mxu0 %v372_v42  ;;  %688 = vmatprep.subr.mxu1 %v374_v43  ;;  %v439_v42 = vld [vmem:[#allocation6 + $0x4c0] sm:$0xff]  ;;  %v441_v43 = vld [vmem:[#allocation6 + $0x4d0] sm:$0xff] }
  0xce   : > { %618 = vmatpush2.xpose.msra.mxu0 %v371_v44  ;;  %689 = vmatpush2.xpose.msra.mxu1 %v373_v45  ;;  %v436_v44 = vld [vmem:[#allocation6 + $0x4a8] sm:$0xff]  ;;  %v438_v45 = vld [vmem:[#allocation6 + $0x4b8] sm:$0xff] }
  0xcf   : > { %619 = vmatprep.subr.mxu0 %v368_v47  ;;  %690 = vmatprep.subr.mxu1 %v370_v48  ;;  %v435_v47 = vld [vmem:[#allocation6 + $0x4a0] sm:$0xff]  ;;  %v437_v48 = vld [vmem:[#allocation6 + $0x4b0] sm:$0xff] }
  0xd2   : > { %620 = vmatpush2.xpose.msra.mxu0 %v367_v50  ;;  %691 = vmatpush2.xpose.msra.mxu1 %v369_v51  ;;  %v432_v50 = vld [vmem:[#allocation6 + $0x488] sm:$0xff]  ;;  %v434_v51 = vld [vmem:[#allocation6 + $0x498] sm:$0xff] }
  0xd3   : > { %621 = vmatprep.subr.mxu0 %v364_v52  ;;  %692 = vmatprep.subr.mxu1 %v366_v53  ;;  %v431_v52 = vld [vmem:[#allocation6 + $0x480] sm:$0xff]  ;;  %v433_v53 = vld [vmem:[#allocation6 + $0x490] sm:$0xff] }
  0xd6   : > { %622 = vmatpush2.xpose.msra.mxu0 %v363_v54  ;;  %693 = vmatpush2.xpose.msra.mxu1 %v365_v55  ;;  %v428_v54 = vld [vmem:[#allocation6 + $0x468] sm:$0xff]  ;;  %v430_v55 = vld [vmem:[#allocation6 + $0x478] sm:$0xff] }
  0xd7   : > { %623 = vmatprep.subr.mxu0 %v360_v56  ;;  %694 = vmatprep.subr.mxu1 %v362_v57  ;;  %v427_v56 = vld [vmem:[#allocation6 + $0x460] sm:$0xff]  ;;  %v429_v57 = vld [vmem:[#allocation6 + $0x470] sm:$0xff] }
  0xda   : > { %624 = vmatpush2.xpose.msra.mxu0 %v359_v58  ;;  %695 = vmatpush2.xpose.msra.mxu1 %v361_v59  ;;  %v424_v58 = vld [vmem:[#allocation6 + $0x448] sm:$0xff]  ;;  %v426_v59 = vld [vmem:[#allocation6 + $0x458] sm:$0xff] }
  0xdb   : > { %625 = vmatprep.subr.mxu0 %v356_v60  ;;  %696 = vmatprep.subr.mxu1 %v358_v61  ;;  %v423_v60 = vld [vmem:[#allocation6 + $0x440] sm:$0xff]  ;;  %v425_v61 = vld [vmem:[#allocation6 + $0x450] sm:$0xff] }
  0xde   : > { %626 = vmatpush2.xpose.msra.mxu0 %v355_v62  ;;  %697 = vmatpush2.xpose.msra.mxu1 %v357_v63  ;;  %v420_v62 = vld [vmem:[#allocation6 + $0x428] sm:$0xff]  ;;  %v422_v63 = vld [vmem:[#allocation6 + $0x438] sm:$0xff] }
  0xdf   : > { %627 = vmatprep.subr.mxu0 %v352_v0  ;;  %698 = vmatprep.subr.mxu1 %v354_v1  ;;  %v419_v0 = vld [vmem:[#allocation6 + $0x420] sm:$0xff]  ;;  %v421_v1 = vld [vmem:[#allocation6 + $0x430] sm:$0xff] }
  0xe2   : > { %628 = vmatpush2.xpose.msra.mxu0 %v351_v2  ;;  %699 = vmatpush2.xpose.msra.mxu1 %v353_v3  ;;  %v416_v2 = vld [vmem:[#allocation6 + $0x408] sm:$0xff]  ;;  %v418_v3 = vld [vmem:[#allocation6 + $0x418] sm:$0xff] }
  0xe3   : > { %707 = vmatprep.subr.mxu0 %v476_v4  ;;  %778 = vmatprep.subr.mxu1 %v478_v5  ;;  %v415_v4 = vld [vmem:[#allocation6 + $0x400] sm:$0xff]  ;;  %v417_v5 = vld [vmem:[#allocation6 + $0x410] sm:$0xff] }
  0xe5   : > { %630 = vmatmul.mubr.f32.vlgmr.msra.gmra.mxu0 %v2010_v6  ;;  %701 = vmatmul.mubr.f32.vlgmr.msra.gmra.mxu1 %v2013_v7 }
  0xe6   : > { %708 = vmatpush1.xpose.msra.mxu0 %v475_v8  ;;  %779 = vmatpush1.xpose.msra.mxu1 %v477_v9  ;;  %v540_v8 = vld [vmem:[#allocation6 + $0x7e8] sm:$0xff]  ;;  %v542_v9 = vld [vmem:[#allocation6 + $0x7f8] sm:$0xff] }
  0xe7   : > { %709 = vmatprep.subr.mxu0 %v472_v10  ;;  %780 = vmatprep.subr.mxu1 %v474_v11  ;;  %v539_v10 = vld [vmem:[#allocation6 + $0x7e0] sm:$0xff]  ;;  %v541_v11 = vld [vmem:[#allocation6 + $0x7f0] sm:$0xff] }
  0xe8   : > { %771 = vmatprep.mubr.f32.mxu0 %v2002_v46  ;;  %842 = vmatprep.mubr.f32.mxu1 %v2005_v49  ;;  %v459_v46 = vld [vmem:[#allocation6 + $0x560] sm:$0xff]  ;;  %v461_v49 = vld [vmem:[#allocation6 + $0x570] sm:$0xff] }
  0xea   : > { %710 = vmatpush1.xpose.msra.mxu0 %v471_v12  ;;  %781 = vmatpush1.xpose.msra.mxu1 %v473_v13  ;;  %v536_v12 = vld [vmem:[#allocation6 + $0x7c8] sm:$0xff]  ;;  %v538_v13 = vld [vmem:[#allocation6 + $0x7d8] sm:$0xff] }
  0xeb   : > { %711 = vmatprep.subr.mxu0 %v468_v14  ;;  %782 = vmatprep.subr.mxu1 %v470_v15  ;;  %v535_v14 = vld [vmem:[#allocation6 + $0x7c0] sm:$0xff]  ;;  %v537_v15 = vld [vmem:[#allocation6 + $0x7d0] sm:$0xff] }
  0xee   : > { %712 = vmatpush1.xpose.msra.mxu0 %v467_v16  ;;  %783 = vmatpush1.xpose.msra.mxu1 %v469_v17  ;;  %v532_v16 = vld [vmem:[#allocation6 + $0x7a8] sm:$0xff]  ;;  %v534_v17 = vld [vmem:[#allocation6 + $0x7b8] sm:$0xff] }
  0xef   : > { %713 = vmatprep.subr.mxu0 %v464_v18  ;;  %784 = vmatprep.subr.mxu1 %v466_v19  ;;  %v531_v18 = vld [vmem:[#allocation6 + $0x7a0] sm:$0xff]  ;;  %v533_v19 = vld [vmem:[#allocation6 + $0x7b0] sm:$0xff] }
  0xf2   : > { %714 = vmatpush1.xpose.msra.mxu0 %v463_v20  ;;  %785 = vmatpush1.xpose.msra.mxu1 %v465_v21  ;;  %v528_v20 = vld [vmem:[#allocation6 + $0x788] sm:$0xff]  ;;  %v530_v21 = vld [vmem:[#allocation6 + $0x798] sm:$0xff] }
  0xf3   : > { %715 = vmatprep.subr.mxu0 %v460_v22  ;;  %786 = vmatprep.subr.mxu1 %v462_v23  ;;  %v527_v22 = vld [vmem:[#allocation6 + $0x780] sm:$0xff]  ;;  %v529_v23 = vld [vmem:[#allocation6 + $0x790] sm:$0xff] }
  0xf6   : > { %716 = vmatpush1.xpose.msra.mxu0 %v459_v46  ;;  %787 = vmatpush1.xpose.msra.mxu1 %v461_v49  ;;  %v524_v46 = vld [vmem:[#allocation6 + $0x768] sm:$0xff]  ;;  %v526_v49 = vld [vmem:[#allocation6 + $0x778] sm:$0xff] }
  0xf7   : > { %717 = vmatprep.subr.mxu0 %v456_v24  ;;  %788 = vmatprep.subr.mxu1 %v458_v25  ;;  %v523_v24 = vld [vmem:[#allocation6 + $0x760] sm:$0xff]  ;;  %v525_v25 = vld [vmem:[#allocation6 + $0x770] sm:$0xff] }
  0xfa   : > { %718 = vmatpush1.xpose.msra.mxu0 %v455_v26  ;;  %789 = vmatpush1.xpose.msra.mxu1 %v457_v27  ;;  %v520_v26 = vld [vmem:[#allocation6 + $0x748] sm:$0xff]  ;;  %v522_v27 = vld [vmem:[#allocation6 + $0x758] sm:$0xff] }
  0xfb   : > { %719 = vmatprep.subr.mxu0 %v452_v28  ;;  %790 = vmatprep.subr.mxu1 %v454_v29  ;;  %v519_v28 = vld [vmem:[#allocation6 + $0x740] sm:$0xff]  ;;  %v521_v29 = vld [vmem:[#allocation6 + $0x750] sm:$0xff] }
  0xfe   : > { %720 = vmatpush1.xpose.msra.mxu0 %v451_v30  ;;  %791 = vmatpush1.xpose.msra.mxu1 %v453_v31  ;;  %v516_v30 = vld [vmem:[#allocation6 + $0x728] sm:$0xff]  ;;  %v518_v31 = vld [vmem:[#allocation6 + $0x738] sm:$0xff] }
  0xff   : > { %721 = vmatprep.subr.mxu0 %v448_v32  ;;  %792 = vmatprep.subr.mxu1 %v450_v33  ;;  %v515_v32 = vld [vmem:[#allocation6 + $0x720] sm:$0xff]  ;;  %v517_v33 = vld [vmem:[#allocation6 + $0x730] sm:$0xff] }
 0x102   : > { %722 = vmatpush1.xpose.msra.mxu0 %v447_v34  ;;  %793 = vmatpush1.xpose.msra.mxu1 %v449_v35  ;;  %v512_v34 = vld [vmem:[#allocation6 + $0x708] sm:$0xff]  ;;  %v514_v35 = vld [vmem:[#allocation6 + $0x718] sm:$0xff] }
 0x103   : > { %723 = vmatprep.subr.mxu0 %v444_v36  ;;  %794 = vmatprep.subr.mxu1 %v446_v37  ;;  %v511_v36 = vld [vmem:[#allocation6 + $0x700] sm:$0xff]  ;;  %v513_v37 = vld [vmem:[#allocation6 + $0x710] sm:$0xff] }
 0x106   : > { %724 = vmatpush1.xpose.msra.mxu0 %v443_v38  ;;  %795 = vmatpush1.xpose.msra.mxu1 %v445_v39  ;;  %v508_v38 = vld [vmem:[#allocation6 + $0x6e8] sm:$0xff]  ;;  %v510_v39 = vld [vmem:[#allocation6 + $0x6f8] sm:$0xff] }
 0x107   : > { %725 = vmatprep.subr.mxu0 %v440_v40  ;;  %796 = vmatprep.subr.mxu1 %v442_v41  ;;  %v507_v40 = vld [vmem:[#allocation6 + $0x6e0] sm:$0xff]  ;;  %v509_v41 = vld [vmem:[#allocation6 + $0x6f0] sm:$0xff] }
 0x10a   : > { %726 = vmatpush1.xpose.msra.mxu0 %v439_v42  ;;  %797 = vmatpush1.xpose.msra.mxu1 %v441_v43  ;;  %v504_v42 = vld [vmem:[#allocation6 + $0x6c8] sm:$0xff]  ;;  %v506_v43 = vld [vmem:[#allocation6 + $0x6d8] sm:$0xff] }
 0x10b   : > { %727 = vmatprep.subr.mxu0 %v436_v44  ;;  %798 = vmatprep.subr.mxu1 %v438_v45  ;;  %v503_v44 = vld [vmem:[#allocation6 + $0x6c0] sm:$0xff]  ;;  %v505_v45 = vld [vmem:[#allocation6 + $0x6d0] sm:$0xff] }
 0x10e   : > { %728 = vmatpush1.xpose.msra.mxu0 %v435_v47  ;;  %799 = vmatpush1.xpose.msra.mxu1 %v437_v48  ;;  %v500_v47 = vld [vmem:[#allocation6 + $0x6a8] sm:$0xff]  ;;  %v502_v48 = vld [vmem:[#allocation6 + $0x6b8] sm:$0xff] }
 0x10f   : > { %729 = vmatprep.subr.mxu0 %v432_v50  ;;  %800 = vmatprep.subr.mxu1 %v434_v51  ;;  %v499_v50 = vld [vmem:[#allocation6 + $0x6a0] sm:$0xff]  ;;  %v501_v51 = vld [vmem:[#allocation6 + $0x6b0] sm:$0xff] }
 0x112   : > { %730 = vmatpush1.xpose.msra.mxu0 %v431_v52  ;;  %801 = vmatpush1.xpose.msra.mxu1 %v433_v53  ;;  %v496_v52 = vld [vmem:[#allocation6 + $0x688] sm:$0xff]  ;;  %v498_v53 = vld [vmem:[#allocation6 + $0x698] sm:$0xff] }
 0x113   : > { %731 = vmatprep.subr.mxu0 %v428_v54  ;;  %802 = vmatprep.subr.mxu1 %v430_v55  ;;  %v495_v54 = vld [vmem:[#allocation6 + $0x680] sm:$0xff]  ;;  %v497_v55 = vld [vmem:[#allocation6 + $0x690] sm:$0xff] }
 0x116   : > { %732 = vmatpush1.xpose.msra.mxu0 %v427_v56  ;;  %803 = vmatpush1.xpose.msra.mxu1 %v429_v57  ;;  %v492_v56 = vld [vmem:[#allocation6 + $0x668] sm:$0xff]  ;;  %v494_v57 = vld [vmem:[#allocation6 + $0x678] sm:$0xff] }
 0x117   : > { %733 = vmatprep.subr.mxu0 %v424_v58  ;;  %804 = vmatprep.subr.mxu1 %v426_v59  ;;  %v491_v58 = vld [vmem:[#allocation6 + $0x660] sm:$0xff]  ;;  %v493_v59 = vld [vmem:[#allocation6 + $0x670] sm:$0xff] }
 0x11a   : > { %734 = vmatpush1.xpose.msra.mxu0 %v423_v60  ;;  %805 = vmatpush1.xpose.msra.mxu1 %v425_v61  ;;  %v488_v60 = vld [vmem:[#allocation6 + $0x648] sm:$0xff]  ;;  %v490_v61 = vld [vmem:[#allocation6 + $0x658] sm:$0xff] }
 0x11b   : > { %735 = vmatprep.subr.mxu0 %v420_v62  ;;  %806 = vmatprep.subr.mxu1 %v422_v63  ;;  %v487_v62 = vld [vmem:[#allocation6 + $0x640] sm:$0xff]  ;;  %v489_v63 = vld [vmem:[#allocation6 + $0x650] sm:$0xff] }
 0x11e   : > { %736 = vmatpush1.xpose.msra.mxu0 %v419_v0  ;;  %807 = vmatpush1.xpose.msra.mxu1 %v421_v1  ;;  %v484_v0 = vld [vmem:[#allocation6 + $0x628] sm:$0xff]  ;;  %v486_v1 = vld [vmem:[#allocation6 + $0x638] sm:$0xff] }
 0x11f   : > { %737 = vmatprep.subr.mxu0 %v416_v2  ;;  %808 = vmatprep.subr.mxu1 %v418_v3  ;;  %v483_v2 = vld [vmem:[#allocation6 + $0x620] sm:$0xff]  ;;  %v485_v3 = vld [vmem:[#allocation6 + $0x630] sm:$0xff] }
 0x122   : > { %738 = vmatpush1.xpose.msra.mxu0 %v415_v4  ;;  %809 = vmatpush1.xpose.msra.mxu1 %v417_v5  ;;  %v480_v4 = vld [vmem:[#allocation6 + $0x608] sm:$0xff]  ;;  %v482_v5 = vld [vmem:[#allocation6 + $0x618] sm:$0xff] }
 0x123   : > { %739 = vmatprep.subr.mxu0 %v540_v8  ;;  %810 = vmatprep.subr.mxu1 %v542_v9  ;;  %v479_v8 = vld [vmem:[#allocation6 + $0x600] sm:$0xff]  ;;  %v481_v9 = vld [vmem:[#allocation6 + $0x610] sm:$0xff] }
 0x126   : > { %740 = vmatpush2.xpose.msra.mxu0 %v539_v10  ;;  %811 = vmatpush2.xpose.msra.mxu1 %v541_v11  ;;  %v918_v10 = vld [vmem:[#allocation9 + $0x1e8] sm:$0xff]  ;;  %v920_v11 = vld [vmem:[#allocation9 + $0x1f8] sm:$0xff] }
 0x127   : > { %741 = vmatprep.subr.mxu0 %v536_v12  ;;  %812 = vmatprep.subr.mxu1 %v538_v13  ;;  %v917_v12 = vld [vmem:[#allocation9 + $0x1e0] sm:$0xff]  ;;  %v919_v13 = vld [vmem:[#allocation9 + $0x1f0] sm:$0xff] }
 0x12a   : > { %742 = vmatpush2.xpose.msra.mxu0 %v535_v14  ;;  %813 = vmatpush2.xpose.msra.mxu1 %v537_v15  ;;  %v914_v14 = vld [vmem:[#allocation9 + $0x1c8] sm:$0xff]  ;;  %v916_v15 = vld [vmem:[#allocation9 + $0x1d8] sm:$0xff] }
 0x12b   : > { %743 = vmatprep.subr.mxu0 %v532_v16  ;;  %814 = vmatprep.subr.mxu1 %v534_v17  ;;  %v913_v16 = vld [vmem:[#allocation9 + $0x1c0] sm:$0xff]  ;;  %v915_v17 = vld [vmem:[#allocation9 + $0x1d0] sm:$0xff] }
 0x12e   : > { %744 = vmatpush2.xpose.msra.mxu0 %v531_v18  ;;  %815 = vmatpush2.xpose.msra.mxu1 %v533_v19  ;;  %v910_v18 = vld [vmem:[#allocation9 + $0x1a8] sm:$0xff]  ;;  %v912_v19 = vld [vmem:[#allocation9 + $0x1b8] sm:$0xff] }
 0x12f   : > { %745 = vmatprep.subr.mxu0 %v528_v20  ;;  %816 = vmatprep.subr.mxu1 %v530_v21  ;;  %v909_v20 = vld [vmem:[#allocation9 + $0x1a0] sm:$0xff]  ;;  %v911_v21 = vld [vmem:[#allocation9 + $0x1b0] sm:$0xff] }
 0x132   : > { %746 = vmatpush2.xpose.msra.mxu0 %v527_v22  ;;  %817 = vmatpush2.xpose.msra.mxu1 %v529_v23  ;;  %v906_v22 = vld [vmem:[#allocation9 + $0x188] sm:$0xff]  ;;  %v908_v23 = vld [vmem:[#allocation9 + $0x198] sm:$0xff] }
 0x133   : > { %747 = vmatprep.subr.mxu0 %v524_v46  ;;  %818 = vmatprep.subr.mxu1 %v526_v49  ;;  %v902_v46 = vld [vmem:[#allocation9 + $0x168] sm:$0xff]  ;;  %v904_v49 = vld [vmem:[#allocation9 + $0x178] sm:$0xff] }
 0x136   : > { %748 = vmatpush2.xpose.msra.mxu0 %v523_v24  ;;  %819 = vmatpush2.xpose.msra.mxu1 %v525_v25  ;;  %v901_v24 = vld [vmem:[#allocation9 + $0x160] sm:$0xff]  ;;  %v903_v25 = vld [vmem:[#allocation9 + $0x170] sm:$0xff] }
 0x137   : > { %749 = vmatprep.subr.mxu0 %v520_v26  ;;  %820 = vmatprep.subr.mxu1 %v522_v27  ;;  %v898_v26 = vld [vmem:[#allocation9 + $0x148] sm:$0xff]  ;;  %v900_v27 = vld [vmem:[#allocation9 + $0x158] sm:$0xff] }
 0x13a   : > { %750 = vmatpush2.xpose.msra.mxu0 %v519_v28  ;;  %821 = vmatpush2.xpose.msra.mxu1 %v521_v29  ;;  %v897_v28 = vld [vmem:[#allocation9 + $0x140] sm:$0xff]  ;;  %v899_v29 = vld [vmem:[#allocation9 + $0x150] sm:$0xff] }
 0x13b   : > { %751 = vmatprep.subr.mxu0 %v516_v30  ;;  %822 = vmatprep.subr.mxu1 %v518_v31  ;;  %v894_v30 = vld [vmem:[#allocation9 + $0x128] sm:$0xff]  ;;  %v896_v31 = vld [vmem:[#allocation9 + $0x138] sm:$0xff] }
 0x13e   : > { %752 = vmatpush2.xpose.msra.mxu0 %v515_v32  ;;  %823 = vmatpush2.xpose.msra.mxu1 %v517_v33  ;;  %v893_v32 = vld [vmem:[#allocation9 + $0x120] sm:$0xff]  ;;  %v895_v33 = vld [vmem:[#allocation9 + $0x130] sm:$0xff] }
 0x13f   : > { %753 = vmatprep.subr.mxu0 %v512_v34  ;;  %824 = vmatprep.subr.mxu1 %v514_v35  ;;  %v890_v34 = vld [vmem:[#allocation9 + $0x108] sm:$0xff]  ;;  %v892_v35 = vld [vmem:[#allocation9 + $0x118] sm:$0xff] }
 0x142   : > { %754 = vmatpush2.xpose.msra.mxu0 %v511_v36  ;;  %825 = vmatpush2.xpose.msra.mxu1 %v513_v37  ;;  %v889_v36 = vld [vmem:[#allocation9 + $0x100] sm:$0xff]  ;;  %v891_v37 = vld [vmem:[#allocation9 + $0x110] sm:$0xff] }
 0x143   : > { %755 = vmatprep.subr.mxu0 %v508_v38  ;;  %826 = vmatprep.subr.mxu1 %v510_v39  ;;  %v886_v38 = vld [vmem:[#allocation9 + $0xe8] sm:$0xff]  ;;  %v888_v39 = vld [vmem:[#allocation9 + $0xf8] sm:$0xff] }
 0x146   : > { %756 = vmatpush2.xpose.msra.mxu0 %v507_v40  ;;  %827 = vmatpush2.xpose.msra.mxu1 %v509_v41  ;;  %v885_v40 = vld [vmem:[#allocation9 + $0xe0] sm:$0xff]  ;;  %v887_v41 = vld [vmem:[#allocation9 + $0xf0] sm:$0xff] }
 0x147   : > { %757 = vmatprep.subr.mxu0 %v504_v42  ;;  %828 = vmatprep.subr.mxu1 %v506_v43  ;;  %v882_v42 = vld [vmem:[#allocation9 + $0xc8] sm:$0xff]  ;;  %v884_v43 = vld [vmem:[#allocation9 + $0xd8] sm:$0xff] }
 0x14a   : > { %758 = vmatpush2.xpose.msra.mxu0 %v503_v44  ;;  %829 = vmatpush2.xpose.msra.mxu1 %v505_v45  ;;  %v881_v44 = vld [vmem:[#allocation9 + $0xc0] sm:$0xff]  ;;  %v883_v45 = vld [vmem:[#allocation9 + $0xd0] sm:$0xff] }
 0x14b   : > { %759 = vmatprep.subr.mxu0 %v500_v47  ;;  %830 = vmatprep.subr.mxu1 %v502_v48  ;;  %v878_v47 = vld [vmem:[#allocation9 + $0xa8] sm:$0xff]  ;;  %v880_v48 = vld [vmem:[#allocation9 + $0xb8] sm:$0xff] }
 0x14e   : > { %760 = vmatpush2.xpose.msra.mxu0 %v499_v50  ;;  %831 = vmatpush2.xpose.msra.mxu1 %v501_v51  ;;  %v877_v50 = vld [vmem:[#allocation9 + $0xa0] sm:$0xff]  ;;  %v879_v51 = vld [vmem:[#allocation9 + $0xb0] sm:$0xff] }
 0x14f   : > { %761 = vmatprep.subr.mxu0 %v496_v52  ;;  %832 = vmatprep.subr.mxu1 %v498_v53  ;;  %v874_v52 = vld [vmem:[#allocation9 + $0x88] sm:$0xff]  ;;  %v876_v53 = vld [vmem:[#allocation9 + $0x98] sm:$0xff] }
 0x152   : > { %762 = vmatpush2.xpose.msra.mxu0 %v495_v54  ;;  %833 = vmatpush2.xpose.msra.mxu1 %v497_v55  ;;  %v873_v54 = vld [vmem:[#allocation9 + $0x80] sm:$0xff]  ;;  %v875_v55 = vld [vmem:[#allocation9 + $0x90] sm:$0xff] }
 0x153   : > { %763 = vmatprep.subr.mxu0 %v492_v56  ;;  %834 = vmatprep.subr.mxu1 %v494_v57  ;;  %v870_v56 = vld [vmem:[#allocation9 + $0x68] sm:$0xff]  ;;  %v872_v57 = vld [vmem:[#allocation9 + $0x78] sm:$0xff] }
 0x156   : > { %764 = vmatpush2.xpose.msra.mxu0 %v491_v58  ;;  %835 = vmatpush2.xpose.msra.mxu1 %v493_v59  ;;  %v869_v58 = vld [vmem:[#allocation9 + $0x60] sm:$0xff]  ;;  %v871_v59 = vld [vmem:[#allocation9 + $0x70] sm:$0xff] }
 0x157   : > { %765 = vmatprep.subr.mxu0 %v488_v60  ;;  %836 = vmatprep.subr.mxu1 %v490_v61  ;;  %v866_v60 = vld [vmem:[#allocation9 + $0x48] sm:$0xff]  ;;  %v868_v61 = vld [vmem:[#allocation9 + $0x58] sm:$0xff] }
 0x15a   : > { %766 = vmatpush2.xpose.msra.mxu0 %v487_v62  ;;  %837 = vmatpush2.xpose.msra.mxu1 %v489_v63  ;;  %v865_v62 = vld [vmem:[#allocation9 + $0x40] sm:$0xff]  ;;  %v867_v63 = vld [vmem:[#allocation9 + $0x50] sm:$0xff] }
 0x15b   : > { %767 = vmatprep.subr.mxu0 %v484_v0  ;;  %838 = vmatprep.subr.mxu1 %v486_v1  ;;  %v862_v0 = vld [vmem:[#allocation9 + $0x28] sm:$0xff]  ;;  %v545_v1 = vlaneseq }
 0x15e   : > { %768 = vmatpush2.xpose.msra.mxu0 %v483_v2  ;;  %839 = vmatpush2.xpose.msra.mxu1 %v485_v3  ;;  %v864_v2 = vld [vmem:[#allocation9 + $0x38] sm:$0xff]  ;;  %v861_v3 = vld [vmem:[#allocation9 + $0x20] sm:$0xff] }
 0x15f   : > { %769 = vmatprep.subr.mxu0 %v480_v4  ;;  %840 = vmatprep.subr.mxu1 %v482_v5  ;;  %v863_v4 = vld [vmem:[#allocation9 + $0x30] sm:$0xff]  ;;  %v858_v5 = vld [vmem:[#allocation9 + $0x8] sm:$0xff] }
 0x162   : > { %770 = vmatpush2.xpose.msra.mxu0 %v479_v8  ;;  %841 = vmatpush2.xpose.msra.mxu1 %v481_v9  ;;  %v2021_v8 = vshrl.u32 %v545_v1, 7  ;;  %v860_v9 = vld [vmem:[#allocation9 + $0x18] sm:$0xff]  ;;  %v937_v1 = vld [vmem:[#allocation9 + $0x280] sm:$0xff] }
 0x163   : > { %1135 = vmatprep.subr.mxu0 %v918_v10  ;;  %1206 = vmatprep.subr.mxu1 %v920_v11  ;;  %v857_v10 = vld [vmem:[#allocation9] sm:$0xff]  ;;  %v859_v11 = vld [vmem:[#allocation9 + $0x10] sm:$0xff] }
 0x165   : > { %772 = vmatmul.mubr.f32.vlgmr.msra.gmra.mxu0 %v2010_v6  ;;  %843 = vmatmul.mubr.f32.vlgmr.msra.gmra.mxu1 %v2013_v7  ;;  %v905_v6 = vld [vmem:[#allocation9 + $0x180] sm:$0xff]  ;;  %v907_v7 = vld [vmem:[#allocation9 + $0x190] sm:$0xff] }
 0x166   : > { %1136 = vmatpush1.xpose.msra.mxu0 %v917_v12  ;;  %1207 = vmatpush1.xpose.msra.mxu1 %v919_v13  ;;  %v982_v12 = vld [vmem:[#allocation9 + $0x3e8] sm:$0xff]  ;;  %v551_v13 = vsub.s32 1, %v2021_v8 }
 0x167   : > { %1137 = vmatprep.subr.mxu0 %v914_v14  ;;  %1208 = vmatprep.subr.mxu1 %v916_v15  ;;  %v984_v14 = vld [vmem:[#allocation9 + $0x3f8] sm:$0xff] }
 0x168   : > { %v2024_v15 = vld [vmem:[#allocation8] sm:$0xf] }
 0x16a   : > { %1138 = vmatpush1.xpose.msra.mxu0 %v913_v16  ;;  %1209 = vmatpush1.xpose.msra.mxu1 %v915_v17  ;;  %v981_v16 = vld [vmem:[#allocation9 + $0x3e0] sm:$0xff]  ;;  %v983_v17 = vld [vmem:[#allocation9 + $0x3f0] sm:$0xff] }
 0x16b   : > { %1139 = vmatprep.subr.mxu0 %v910_v18  ;;  %1210 = vmatprep.subr.mxu1 %v912_v19  ;;  %v552_v18 = vrot.slane %v2024_v15, %v551_v13  ;;  %v978_v19 = vld [vmem:[#allocation9 + $0x3c8] sm:$0xff] }
 0x16e   : > { %1140 = vmatpush1.xpose.msra.mxu0 %v909_v20  ;;  %1211 = vmatpush1.xpose.msra.mxu1 %v911_v21  ;;  %v980_v20 = vld [vmem:[#allocation9 + $0x3d8] sm:$0xff] }
 0x16f   : > { %1141 = vmatprep.subr.mxu0 %v906_v22  ;;  %1212 = vmatprep.subr.mxu1 %v908_v23 }
 0x172   : > { %1142 = vmatpush1.xpose.msra.mxu0 %v905_v6  ;;  %1213 = vmatpush1.xpose.msra.mxu1 %v907_v7  ;;  %v977_v7 = vld [vmem:[#allocation9 + $0x3c0] sm:$0xff] }
 0x173   : > { %1143 = vmatprep.subr.mxu0 %v902_v46  ;;  %1214 = vmatprep.subr.mxu1 %v904_v49  ;;  %v979_v46 = vld [vmem:[#allocation9 + $0x3d0] sm:$0xff] }
 0x176   : > { %1144 = vmatpush1.xpose.msra.mxu0 %v901_v24  ;;  %1215 = vmatpush1.xpose.msra.mxu1 %v903_v25  ;;  %v974_v24 = vld [vmem:[#allocation9 + $0x3a8] sm:$0xff]  ;;  %v976_v25 = vld [vmem:[#allocation9 + $0x3b8] sm:$0xff] }
 0x177   : > { %1145 = vmatprep.subr.mxu0 %v898_v26  ;;  %1216 = vmatprep.subr.mxu1 %v900_v27  ;;  %v973_v27 = vld [vmem:[#allocation9 + $0x3a0] sm:$0xff] }
 0x17a   : > { %1146 = vmatpush1.xpose.msra.mxu0 %v897_v28  ;;  %1217 = vmatpush1.xpose.msra.mxu1 %v899_v29  ;;  %v975_v28 = vld [vmem:[#allocation9 + $0x3b0] sm:$0xff]  ;;  %v970_v29 = vld [vmem:[#allocation9 + $0x388] sm:$0xff] }
 0x17b   : > { %1147 = vmatprep.subr.mxu0 %v894_v30  ;;  %1218 = vmatprep.subr.mxu1 %v896_v31  ;;  %v972_v30 = vld [vmem:[#allocation9 + $0x398] sm:$0xff]  ;;  %v969_v31 = vld [vmem:[#allocation9 + $0x380] sm:$0xff] }
 0x17e   : > { %1148 = vmatpush1.xpose.msra.mxu0 %v893_v32  ;;  %1219 = vmatpush1.xpose.msra.mxu1 %v895_v33  ;;  %v971_v32 = vld [vmem:[#allocation9 + $0x390] sm:$0xff]  ;;  %v966_v33 = vld [vmem:[#allocation9 + $0x368] sm:$0xff] }
 0x17f   : > { %1149 = vmatprep.subr.mxu0 %v890_v34  ;;  %1220 = vmatprep.subr.mxu1 %v892_v35  ;;  %v968_v34 = vld [vmem:[#allocation9 + $0x378] sm:$0xff]  ;;  %v965_v35 = vld [vmem:[#allocation9 + $0x360] sm:$0xff] }
 0x182   : > { %1150 = vmatpush1.xpose.msra.mxu0 %v889_v36  ;;  %1221 = vmatpush1.xpose.msra.mxu1 %v891_v37  ;;  %v967_v36 = vld [vmem:[#allocation9 + $0x370] sm:$0xff]  ;;  %v962_v37 = vld [vmem:[#allocation9 + $0x348] sm:$0xff] }
 0x183   : > { %1151 = vmatprep.subr.mxu0 %v886_v38  ;;  %1222 = vmatprep.subr.mxu1 %v888_v39  ;;  %v964_v38 = vld [vmem:[#allocation9 + $0x358] sm:$0xff]  ;;  %v961_v39 = vld [vmem:[#allocation9 + $0x340] sm:$0xff] }
 0x186   : > { %1152 = vmatpush1.xpose.msra.mxu0 %v885_v40  ;;  %1223 = vmatpush1.xpose.msra.mxu1 %v887_v41  ;;  %v963_v40 = vld [vmem:[#allocation9 + $0x350] sm:$0xff]  ;;  %v958_v41 = vld [vmem:[#allocation9 + $0x328] sm:$0xff] }
 0x187   : > { %1153 = vmatprep.subr.mxu0 %v882_v42  ;;  %1224 = vmatprep.subr.mxu1 %v884_v43  ;;  %v960_v42 = vld [vmem:[#allocation9 + $0x338] sm:$0xff]  ;;  %v957_v43 = vld [vmem:[#allocation9 + $0x320] sm:$0xff] }
 0x18a   : > { %1154 = vmatpush1.xpose.msra.mxu0 %v881_v44  ;;  %1225 = vmatpush1.xpose.msra.mxu1 %v883_v45  ;;  %v959_v44 = vld [vmem:[#allocation9 + $0x330] sm:$0xff]  ;;  %v954_v45 = vld [vmem:[#allocation9 + $0x308] sm:$0xff] }
 0x18b   : > { %1155 = vmatprep.subr.mxu0 %v878_v47  ;;  %1226 = vmatprep.subr.mxu1 %v880_v48  ;;  %v956_v47 = vld [vmem:[#allocation9 + $0x318] sm:$0xff]  ;;  %v953_v48 = vld [vmem:[#allocation9 + $0x300] sm:$0xff] }
 0x18e   : > { %1156 = vmatpush1.xpose.msra.mxu0 %v877_v50  ;;  %1227 = vmatpush1.xpose.msra.mxu1 %v879_v51  ;;  %v955_v50 = vld [vmem:[#allocation9 + $0x310] sm:$0xff]  ;;  %v950_v51 = vld [vmem:[#allocation9 + $0x2e8] sm:$0xff] }
 0x18f   : > { %1157 = vmatprep.subr.mxu0 %v874_v52  ;;  %1228 = vmatprep.subr.mxu1 %v876_v53  ;;  %v952_v52 = vld [vmem:[#allocation9 + $0x2f8] sm:$0xff]  ;;  %v949_v53 = vld [vmem:[#allocation9 + $0x2e0] sm:$0xff] }
 0x192   : > { %1158 = vmatpush1.xpose.msra.mxu0 %v873_v54  ;;  %1229 = vmatpush1.xpose.msra.mxu1 %v875_v55  ;;  %v951_v54 = vld [vmem:[#allocation9 + $0x2f0] sm:$0xff]  ;;  %v946_v55 = vld [vmem:[#allocation9 + $0x2c8] sm:$0xff] }
 0x193   : > { %1159 = vmatprep.subr.mxu0 %v870_v56  ;;  %1230 = vmatprep.subr.mxu1 %v872_v57  ;;  %v948_v56 = vld [vmem:[#allocation9 + $0x2d8] sm:$0xff]  ;;  %v945_v57 = vld [vmem:[#allocation9 + $0x2c0] sm:$0xff] }
 0x196   : > { %1160 = vmatpush1.xpose.msra.mxu0 %v869_v58  ;;  %1231 = vmatpush1.xpose.msra.mxu1 %v871_v59  ;;  %v947_v58 = vld [vmem:[#allocation9 + $0x2d0] sm:$0xff]  ;;  %v942_v59 = vld [vmem:[#allocation9 + $0x2a8] sm:$0xff] }
 0x197   : > { %1161 = vmatprep.subr.mxu0 %v866_v60  ;;  %1232 = vmatprep.subr.mxu1 %v868_v61  ;;  %v944_v60 = vld [vmem:[#allocation9 + $0x2b8] sm:$0xff]  ;;  %v941_v61 = vld [vmem:[#allocation9 + $0x2a0] sm:$0xff] }
 0x19a   : > { %1162 = vmatpush1.xpose.msra.mxu0 %v865_v62  ;;  %1233 = vmatpush1.xpose.msra.mxu1 %v867_v63  ;;  %v943_v62 = vld [vmem:[#allocation9 + $0x2b0] sm:$0xff]  ;;  %v938_v63 = vld [vmem:[#allocation9 + $0x288] sm:$0xff] }
 0x19b   : > { %1163 = vmatprep.subr.mxu0 %v862_v0  ;;  %1234 = vmatprep.subr.mxu1 %v864_v2  ;;  %v940_v0 = vld [vmem:[#allocation9 + $0x298] sm:$0xff]  ;;  %v939_v2 = vld [vmem:[#allocation9 + $0x290] sm:$0xff] }
 0x19e   : > { %1164 = vmatpush1.xpose.msra.mxu0 %v861_v3  ;;  %1235 = vmatpush1.xpose.msra.mxu1 %v863_v4  ;;  %v934_v3 = vld [vmem:[#allocation9 + $0x268] sm:$0xff]  ;;  %v936_v4 = vld [vmem:[#allocation9 + $0x278] sm:$0xff] }
 0x19f   : > { %1165 = vmatprep.subr.mxu0 %v858_v5  ;;  %1236 = vmatprep.subr.mxu1 %v860_v9  ;;  %v933_v5 = vld [vmem:[#allocation9 + $0x260] sm:$0xff]  ;;  %v935_v9 = vld [vmem:[#allocation9 + $0x270] sm:$0xff] }
 0x1a2   : > { %1166 = vmatpush1.xpose.msra.mxu0 %v857_v10  ;;  %1237 = vmatpush1.xpose.msra.mxu1 %v859_v11  ;;  %v930_v10 = vld [vmem:[#allocation9 + $0x248] sm:$0xff]  ;;  %v932_v11 = vld [vmem:[#allocation9 + $0x258] sm:$0xff] }
 0x1a3   : > { %1167 = vmatprep.subr.mxu0 %v982_v12  ;;  %1238 = vmatprep.subr.mxu1 %v984_v14  ;;  %v547_v12 = vsub.s32 0, %v2021_v8  ;;  %v929_v14 = vld [vmem:[#allocation9 + $0x240] sm:$0xff] }
 0x1a5   : > { %v2029_v21 = vpop.f32.mrf.mxu0  ;;  %v2031_v22 = vpop.f32.mrf.mxu1 }
 0x1a6   : > { %1168 = vmatpush2.xpose.msra.mxu0 %v981_v16  ;;  %1239 = vmatpush2.xpose.msra.mxu1 %v983_v17  ;;  %v931_v16 = vld [vmem:[#allocation9 + $0x250] sm:$0xff]  ;;  %v926_v17 = vld [vmem:[#allocation9 + $0x228] sm:$0xff] }
 0x1a7   : > { %v633_v23 = vpop.f32.mrf.mxu0  ;;  %v704_v6 = vpop.f32.mrf.mxu1  ;;  %1169 = vmatprep.subr.mxu0 %v978_v19  ;;  %1240 = vmatprep.subr.mxu1 %v980_v20  ;;  %v548_v19 = vrot.slane %v2024_v15, %v547_v12  ;;  %v925_v20 = vld [vmem:[#allocation9 + $0x220] sm:$0xff] }
 0x1a8   : > { %v634_v49 = vadd.f32 %v633_v23, %v552_v18  ;;  %v928_v18 = vld [vmem:[#allocation9 + $0x238] sm:$0xff]  ;;  %v927_v23 = vld [vmem:[#allocation9 + $0x230] sm:$0xff] }
 0x1aa   : > { %v2033_v26 = vadd.f32 %v704_v6, %v634_v49  ;;  %1170 = vmatpush2.xpose.msra.mxu0 %v977_v7  ;;  %1241 = vmatpush2.xpose.msra.mxu1 %v979_v46  ;;  %v922_v6 = vld [vmem:[#allocation9 + $0x208] sm:$0xff]  ;;  %v924_v7 = vld [vmem:[#allocation9 + $0x218] sm:$0xff]  ;;  %v632_v46 = vadd.f32 %v2029_v21, %v548_v19  ;;  %v921_v49 = vld [vmem:[#allocation9 + $0x200] sm:$0xff] }
 0x1ab   : > { %1171 = vmatprep.subr.mxu0 %v974_v24  ;;  %1242 = vmatprep.subr.mxu1 %v976_v25  ;;  %v923_v24 = vld [vmem:[#allocation9 + $0x210] sm:$0xff]  ;;  %v1046_v25 = vld [vmem:[#allocation9 + $0x5e8] sm:$0xff]  ;;  %v1041_v21 = vld [vmem:[#allocation9 + $0x5c0] sm:$0xff] }
 0x1ac   : > { %1199 = vmatprep.mubr.f32.mxu0 %v2033_v26  ;;  %v1101_v19 = vld [vmem:[#allocation9 + $0x7a0] sm:$0xff] }
 0x1ae   : > { %1172 = vmatpush2.xpose.msra.mxu0 %v973_v27  ;;  %1243 = vmatpush2.xpose.msra.mxu1 %v975_v28  ;;  %v1048_v27 = vld [vmem:[#allocation9 + $0x5f8] sm:$0xff]  ;;  %v2042_v28 = vadd.f32 %v2031_v22, %v632_v46  ;;  %v1033_v22 = vld [vmem:[#allocation9 + $0x580] sm:$0xff]  ;;  %v1094_v46 = vld [vmem:[#allocation9 + $0x768] sm:$0xff] }
 0x1af   : > { %1173 = vmatprep.subr.mxu0 %v970_v29  ;;  %1244 = vmatprep.subr.mxu1 %v972_v30  ;;  %v1045_v29 = vld [vmem:[#allocation9 + $0x5e0] sm:$0xff]  ;;  %v1042_v30 = vld [vmem:[#allocation9 + $0x5c8] sm:$0xff] }
 0x1b2   : > { %1174 = vmatpush2.xpose.msra.mxu0 %v969_v31  ;;  %1245 = vmatpush2.xpose.msra.mxu1 %v971_v32  ;;  %v1038_v31 = vld [vmem:[#allocation9 + $0x5a8] sm:$0xff]  ;;  %v1037_v32 = vld [vmem:[#allocation9 + $0x5a0] sm:$0xff] }
 0x1b3   : > { %1175 = vmatprep.subr.mxu0 %v966_v33  ;;  %1246 = vmatprep.subr.mxu1 %v968_v34  ;;  %v1034_v33 = vld [vmem:[#allocation9 + $0x588] sm:$0xff] }
 0x1b4   : > { %v1030_v34 = vld [vmem:[#allocation9 + $0x568] sm:$0xff] }
 0x1b6   : > { %1176 = vmatpush2.xpose.msra.mxu0 %v965_v35  ;;  %1247 = vmatpush2.xpose.msra.mxu1 %v967_v36  ;;  %v1029_v35 = vld [vmem:[#allocation9 + $0x560] sm:$0xff]  ;;  %v1026_v36 = vld [vmem:[#allocation9 + $0x548] sm:$0xff] }
 0x1b7   : > { %1177 = vmatprep.subr.mxu0 %v962_v37  ;;  %1248 = vmatprep.subr.mxu1 %v964_v38  ;;  %v1025_v37 = vld [vmem:[#allocation9 + $0x540] sm:$0xff]  ;;  %v1022_v38 = vld [vmem:[#allocation9 + $0x528] sm:$0xff] }
 0x1ba   : > { %1178 = vmatpush2.xpose.msra.mxu0 %v961_v39  ;;  %1249 = vmatpush2.xpose.msra.mxu1 %v963_v40  ;;  %v1018_v39 = vld [vmem:[#allocation9 + $0x508] sm:$0xff]  ;;  %v1017_v40 = vld [vmem:[#allocation9 + $0x500] sm:$0xff] }
 0x1bb   : > { %1179 = vmatprep.subr.mxu0 %v958_v41  ;;  %1250 = vmatprep.subr.mxu1 %v960_v42  ;;  %v1014_v41 = vld [vmem:[#allocation9 + $0x4e8] sm:$0xff]  ;;  %v1013_v42 = vld [vmem:[#allocation9 + $0x4e0] sm:$0xff] }
 0x1be   : > { %1180 = vmatpush2.xpose.msra.mxu0 %v957_v43  ;;  %1251 = vmatpush2.xpose.msra.mxu1 %v959_v44  ;;  %v1010_v43 = vld [vmem:[#allocation9 + $0x4c8] sm:$0xff]  ;;  %v1009_v44 = vld [vmem:[#allocation9 + $0x4c0] sm:$0xff] }
 0x1bf   : > { %1181 = vmatprep.subr.mxu0 %v954_v45  ;;  %1252 = vmatprep.subr.mxu1 %v956_v47  ;;  %v1006_v45 = vld [vmem:[#allocation9 + $0x4a8] sm:$0xff]  ;;  %v1005_v47 = vld [vmem:[#allocation9 + $0x4a0] sm:$0xff] }
 0x1c2   : > { %1182 = vmatpush2.xpose.msra.mxu0 %v953_v48  ;;  %1253 = vmatpush2.xpose.msra.mxu1 %v955_v50  ;;  %v1002_v48 = vld [vmem:[#allocation9 + $0x488] sm:$0xff]  ;;  %v1001_v50 = vld [vmem:[#allocation9 + $0x480] sm:$0xff] }
 0x1c3   : > { %1183 = vmatprep.subr.mxu0 %v950_v51  ;;  %1254 = vmatprep.subr.mxu1 %v952_v52  ;;  %v998_v51 = vld [vmem:[#allocation9 + $0x468] sm:$0xff]  ;;  %v997_v52 = vld [vmem:[#allocation9 + $0x460] sm:$0xff] }
 0x1c6   : > { %1184 = vmatpush2.xpose.msra.mxu0 %v949_v53  ;;  %1255 = vmatpush2.xpose.msra.mxu1 %v951_v54  ;;  %v994_v53 = vld [vmem:[#allocation9 + $0x448] sm:$0xff]  ;;  %v993_v54 = vld [vmem:[#allocation9 + $0x440] sm:$0xff] }
 0x1c7   : > { %1185 = vmatprep.subr.mxu0 %v946_v55  ;;  %1256 = vmatprep.subr.mxu1 %v948_v56  ;;  %v990_v55 = vld [vmem:[#allocation9 + $0x428] sm:$0xff]  ;;  %v989_v56 = vld [vmem:[#allocation9 + $0x420] sm:$0xff] }
 0x1ca   : > { %1186 = vmatpush2.xpose.msra.mxu0 %v945_v57  ;;  %1257 = vmatpush2.xpose.msra.mxu1 %v947_v58  ;;  %v986_v57 = vld [vmem:[#allocation9 + $0x408] sm:$0xff]  ;;  %v985_v58 = vld [vmem:[#allocation9 + $0x400] sm:$0xff] }
 0x1cb   : > { %1187 = vmatprep.subr.mxu0 %v942_v59  ;;  %1258 = vmatprep.subr.mxu1 %v944_v60  ;;  %v555_v59 = vsub.s32 2, %v2021_v8  ;;  %v1110_v60 = vld [vmem:[#allocation9 + $0x7e8] sm:$0xff] }
 0x1ce   : > { %1188 = vmatpush2.xpose.msra.mxu0 %v941_v61  ;;  %1259 = vmatpush2.xpose.msra.mxu1 %v943_v62  ;;  %v559_v61 = vsub.s32 3, %v2021_v8  ;;  %v556_v62 = vrot.slane %v2024_v15, %v555_v59 }
 0x1cf   : > { %1189 = vmatprep.subr.mxu0 %v938_v63  ;;  %1260 = vmatprep.subr.mxu1 %v940_v0  ;;  %v1109_v63 = vld [vmem:[#allocation9 + $0x7e0] sm:$0xff] }
 0x1d0   : > { %v560_v0 = vrot.slane %v2024_v15, %v559_v61  ;;  %v1044_v15 = vld [vmem:[#allocation9 + $0x5d8] sm:$0xff] }
 0x1d2   : > { %1190 = vmatpush2.xpose.msra.mxu0 %v937_v1  ;;  %1261 = vmatpush2.xpose.msra.mxu1 %v939_v2  ;;  %v1106_v1 = vld [vmem:[#allocation9 + $0x7c8] sm:$0xff] }
 0x1d3   : > { %1191 = vmatprep.subr.mxu0 %v934_v3  ;;  %1262 = vmatprep.subr.mxu1 %v936_v4 }
 0x1d6   : > { %1192 = vmatpush2.xpose.msra.mxu0 %v933_v5  ;;  %1263 = vmatpush2.xpose.msra.mxu1 %v935_v9  ;;  %v1105_v9 = vld [vmem:[#allocation9 + $0x7c0] sm:$0xff] }
 0x1d7   : > { %1193 = vmatprep.subr.mxu0 %v930_v10  ;;  %1264 = vmatprep.subr.mxu1 %v932_v11  ;;  %v1102_v11 = vld [vmem:[#allocation9 + $0x7a8] sm:$0xff] }
 0x1da   : > { %1194 = vmatpush2.xpose.msra.mxu0 %v929_v14  ;;  %1265 = vmatpush2.xpose.msra.mxu1 %v931_v16 }
 0x1db   : > { %1195 = vmatprep.subr.mxu0 %v926_v17  ;;  %1266 = vmatprep.subr.mxu1 %v928_v18  ;;  %v1047_v18 = vld [vmem:[#allocation9 + $0x5f0] sm:$0xff] }
 0x1de   : > { %1196 = vmatpush2.xpose.msra.mxu0 %v925_v20  ;;  %1267 = vmatpush2.xpose.msra.mxu1 %v927_v23  ;;  %v1098_v20 = vld [vmem:[#allocation9 + $0x788] sm:$0xff]  ;;  %v1043_v23 = vld [vmem:[#allocation9 + $0x5d0] sm:$0xff] }
 0x1df   : > { %1197 = vmatprep.subr.mxu0 %v922_v6  ;;  %1268 = vmatprep.subr.mxu1 %v924_v7  ;;  %v1097_v6 = vld [vmem:[#allocation9 + $0x780] sm:$0xff]  ;;  %v1040_v7 = vld [vmem:[#allocation9 + $0x5b8] sm:$0xff] }
 0x1e2   : > { %1198 = vmatpush2.xpose.msra.mxu0 %v921_v49  ;;  %1269 = vmatpush2.xpose.msra.mxu1 %v923_v24  ;;  %v1039_v49 = vld [vmem:[#allocation9 + $0x5b0] sm:$0xff]  ;;  %v1093_v24 = vld [vmem:[#allocation9 + $0x760] sm:$0xff] }
 0x1e3   : > { %1277 = vmatprep.subr.mxu0 %v1046_v25  ;;  %1348 = vmatprep.subr.mxu1 %v1048_v27  ;;  %v1036_v25 = vld [vmem:[#allocation9 + $0x598] sm:$0xff]  ;;  %v1090_v27 = vld [vmem:[#allocation9 + $0x748] sm:$0xff] }
 0x1e5   : > { %1200 = vmatmul.mubr.f32.vlgmr.msra.gmra.mxu0 %v2042_v28 }
 0x1e6   : > { %1278 = vmatpush1.xpose.msra.mxu0 %v1045_v29  ;;  %1341 = vmatprep.mubr.f32.mxu0 %v2033_v26  ;;  %v1021_v26 = vld [vmem:[#allocation9 + $0x520] sm:$0xff]  ;;  %v1035_v29 = vld [vmem:[#allocation9 + $0x590] sm:$0xff] }
 0x1e7   : > { %1279 = vmatprep.subr.mxu0 %v1042_v30  ;;  %v1089_v30 = vld [vmem:[#allocation9 + $0x740] sm:$0xff] }
 0x1ea   : > { %1280 = vmatpush1.xpose.msra.mxu0 %v1041_v21  ;;  %v1032_v21 = vld [vmem:[#allocation9 + $0x578] sm:$0xff] }
 0x1eb   : > { %1281 = vmatprep.subr.mxu0 %v1038_v31  ;;  %v1086_v31 = vld [vmem:[#allocation9 + $0x728] sm:$0xff] }
 0x1ee   : > { %1282 = vmatpush1.xpose.msra.mxu0 %v1037_v32  ;;  %v1031_v32 = vld [vmem:[#allocation9 + $0x570] sm:$0xff] }
 0x1ef   : > { %1283 = vmatprep.subr.mxu0 %v1034_v33  ;;  %v1085_v33 = vld [vmem:[#allocation9 + $0x720] sm:$0xff] }
 0x1f2   : > { %1284 = vmatpush1.xpose.msra.mxu0 %v1033_v22  ;;  %v1028_v22 = vld [vmem:[#allocation9 + $0x558] sm:$0xff] }
 0x1f3   : > { %1285 = vmatprep.subr.mxu0 %v1030_v34  ;;  %v1082_v34 = vld [vmem:[#allocation9 + $0x708] sm:$0xff] }
 0x1f6   : > { %1286 = vmatpush1.xpose.msra.mxu0 %v1029_v35  ;;  %v1027_v35 = vld [vmem:[#allocation9 + $0x550] sm:$0xff] }
 0x1f7   : > { %1287 = vmatprep.subr.mxu0 %v1026_v36  ;;  %v1081_v36 = vld [vmem:[#allocation9 + $0x700] sm:$0xff] }
 0x1fa   : > { %1288 = vmatpush1.xpose.msra.mxu0 %v1025_v37  ;;  %v1024_v37 = vld [vmem:[#allocation9 + $0x538] sm:$0xff] }
 0x1fb   : > { %1289 = vmatprep.subr.mxu0 %v1022_v38  ;;  %v1078_v38 = vld [vmem:[#allocation9 + $0x6e8] sm:$0xff] }
 0x1fe   : > { %1290 = vmatpush1.xpose.msra.mxu0 %v1021_v26  ;;  %v1023_v26 = vld [vmem:[#allocation9 + $0x530] sm:$0xff] }
 0x1ff   : > { %1291 = vmatprep.subr.mxu0 %v1018_v39  ;;  %v1077_v39 = vld [vmem:[#allocation9 + $0x6e0] sm:$0xff] }
 0x202   : > { %1292 = vmatpush1.xpose.msra.mxu0 %v1017_v40  ;;  %v1020_v40 = vld [vmem:[#allocation9 + $0x518] sm:$0xff] }
 0x203   : > { %1293 = vmatprep.subr.mxu0 %v1014_v41  ;;  %v1074_v41 = vld [vmem:[#allocation9 + $0x6c8] sm:$0xff] }
 0x206   : > { %1294 = vmatpush1.xpose.msra.mxu0 %v1013_v42  ;;  %v1019_v42 = vld [vmem:[#allocation9 + $0x510] sm:$0xff] }
 0x207   : > { %1295 = vmatprep.subr.mxu0 %v1010_v43  ;;  %v1073_v43 = vld [vmem:[#allocation9 + $0x6c0] sm:$0xff] }
 0x20a   : > { %1296 = vmatpush1.xpose.msra.mxu0 %v1009_v44  ;;  %v1016_v44 = vld [vmem:[#allocation9 + $0x4f8] sm:$0xff] }
 0x20b   : > { %1297 = vmatprep.subr.mxu0 %v1006_v45  ;;  %v1070_v45 = vld [vmem:[#allocation9 + $0x6a8] sm:$0xff] }
 0x20e   : > { %1298 = vmatpush1.xpose.msra.mxu0 %v1005_v47  ;;  %v1015_v47 = vld [vmem:[#allocation9 + $0x4f0] sm:$0xff] }
 0x20f   : > { %1299 = vmatprep.subr.mxu0 %v1002_v48  ;;  %v1069_v48 = vld [vmem:[#allocation9 + $0x6a0] sm:$0xff] }
 0x212   : > { %1300 = vmatpush1.xpose.msra.mxu0 %v1001_v50  ;;  %v1012_v50 = vld [vmem:[#allocation9 + $0x4d8] sm:$0xff] }
 0x213   : > { %1301 = vmatprep.subr.mxu0 %v998_v51  ;;  %v1066_v51 = vld [vmem:[#allocation9 + $0x688] sm:$0xff] }
 0x216   : > { %1302 = vmatpush1.xpose.msra.mxu0 %v997_v52  ;;  %v1011_v52 = vld [vmem:[#allocation9 + $0x4d0] sm:$0xff] }
 0x217   : > { %1303 = vmatprep.subr.mxu0 %v994_v53  ;;  %v1065_v53 = vld [vmem:[#allocation9 + $0x680] sm:$0xff] }
 0x21a   : > { %1304 = vmatpush1.xpose.msra.mxu0 %v993_v54  ;;  %v1008_v54 = vld [vmem:[#allocation9 + $0x4b8] sm:$0xff] }
 0x21b   : > { %1305 = vmatprep.subr.mxu0 %v990_v55  ;;  %v1062_v55 = vld [vmem:[#allocation9 + $0x668] sm:$0xff] }
 0x21e   : > { %1306 = vmatpush1.xpose.msra.mxu0 %v989_v56  ;;  %v1007_v56 = vld [vmem:[#allocation9 + $0x4b0] sm:$0xff] }
 0x21f   : > { %1307 = vmatprep.subr.mxu0 %v986_v57  ;;  %v1061_v57 = vld [vmem:[#allocation9 + $0x660] sm:$0xff] }
 0x222   : > { %1308 = vmatpush1.xpose.msra.mxu0 %v985_v58  ;;  %v1004_v58 = vld [vmem:[#allocation9 + $0x498] sm:$0xff] }
 0x223   : > { %1309 = vmatprep.subr.mxu0 %v1110_v60  ;;  %v1058_v60 = vld [vmem:[#allocation9 + $0x648] sm:$0xff] }
 0x225   : > { %v773_v2 = vpop.f32.mrf.mxu0  ;;  %v844_v3 = vpop.f32.mrf.mxu1 }
 0x226   : > { %1310 = vmatpush2.xpose.msra.mxu0 %v1109_v63  ;;  %v774_v4 = vadd.f32 %v773_v2, %v556_v62  ;;  %v1003_v62 = vld [vmem:[#allocation9 + $0x490] sm:$0xff]  ;;  %v1057_v63 = vld [vmem:[#allocation9 + $0x640] sm:$0xff] }
 0x227   : > { %v775_v5 = vpop.f32.mrf.mxu0  ;;  %1311 = vmatprep.subr.mxu0 %v1106_v1  ;;  %v846_v14 = vpop.f32.mrf.mxu1  ;;  %v1054_v1 = vld [vmem:[#allocation9 + $0x628] sm:$0xff]  ;;  %v999_v2 = vld [vmem:[#allocation9 + $0x470] sm:$0xff] }
 0x228   : > { %v776_v10 = vadd.f32 %v775_v5, %v560_v0  ;;  %v2054_v17 = vadd.f32 %v844_v3, %v774_v4  ;;  %v1000_v0 = vld [vmem:[#allocation9 + $0x478] sm:$0xff]  ;;  %v1053_v3 = vld [vmem:[#allocation9 + $0x620] sm:$0xff]  ;;  %v1050_v5 = vld [vmem:[#allocation9 + $0x608] sm:$0xff] }
 0x229   : > { %v996_v4 = vld [vmem:[#allocation9 + $0x458] sm:$0xff] }
 0x22a   : > { %v847_v16 = vadd.f32 %v846_v14, %v776_v10  ;;  %1312 = vmatpush2.xpose.msra.mxu0 %v1105_v9  ;;  %v995_v9 = vld [vmem:[#allocation9 + $0x450] sm:$0xff]  ;;  %v1049_v10 = vld [vmem:[#allocation9 + $0x600] sm:$0xff] }
 0x22b   : > { %1313 = vmatprep.subr.mxu0 %v1102_v11  ;;  %v992_v11 = vld [vmem:[#allocation9 + $0x438] sm:$0xff]  ;;  %v991_v14 = vld [vmem:[#allocation9 + $0x430] sm:$0xff] }
 0x22c   : > { %1270 = vmatprep.mubr.f32.mxu1 %v847_v16 }
 0x22d   : > { %1271 = vmatmul.mubr.f32.vlgmr.msra.gmra.mxu1 %v2054_v17 }
 0x22e   : > { %1349 = vmatpush1.xpose.msra.mxu1 %v1047_v18  ;;  %1314 = vmatpush2.xpose.msra.mxu0 %v1101_v19  ;;  %v987_v18 = vld [vmem:[#allocation9 + $0x410] sm:$0xff]  ;;  %v1112_v19 = vld [vmem:[#allocation9 + $0x7f8] sm:$0xff] }
 0x22f   : > { %1412 = vmatprep.mubr.f32.mxu1 %v847_v16  ;;  %1350 = vmatprep.subr.mxu1 %v1044_v15  ;;  %v988_v16 = vld [vmem:[#allocation9 + $0x418] sm:$0xff]  ;;  %v1111_v15 = vld [vmem:[#allocation9 + $0x7f0] sm:$0xff] }
 0x230   : > { %1315 = vmatprep.subr.mxu0 %v1098_v20  ;;  %v1108_v20 = vld [vmem:[#allocation9 + $0x7d8] sm:$0xff] }
 0x232   : > { %1351 = vmatpush1.xpose.msra.mxu1 %v1043_v23  ;;  %1316 = vmatpush2.xpose.msra.mxu0 %v1097_v6  ;;  %v1107_v23 = vld [vmem:[#allocation9 + $0x7d0] sm:$0xff]  ;;  %v1104_v6 = vld [vmem:[#allocation9 + $0x7b8] sm:$0xff] }
 0x233   : > { %1352 = vmatprep.subr.mxu1 %v1040_v7  ;;  %1317 = vmatprep.subr.mxu0 %v1094_v46  ;;  %v1103_v7 = vld [vmem:[#allocation9 + $0x7b0] sm:$0xff]  ;;  %v1100_v46 = vld [vmem:[#allocation9 + $0x798] sm:$0xff] }
 0x236   : > { %1353 = vmatpush1.xpose.msra.mxu1 %v1039_v49  ;;  %1318 = vmatpush2.xpose.msra.mxu0 %v1093_v24  ;;  %v1099_v49 = vld [vmem:[#allocation9 + $0x790] sm:$0xff] }
 0x237   : > { %1354 = vmatprep.subr.mxu1 %v1036_v25  ;;  %1319 = vmatprep.subr.mxu0 %v1090_v27  ;;  %v1095_v24 = vld [vmem:[#allocation9 + $0x770] sm:$0xff]  ;;  %v1092_v25 = vld [vmem:[#allocation9 + $0x758] sm:$0xff] }
 0x238   : > { %v1091_v27 = vld [vmem:[#allocation9 + $0x750] sm:$0xff] }
 0x23a   : > { %1355 = vmatpush1.xpose.msra.mxu1 %v1035_v29  ;;  %1320 = vmatpush2.xpose.msra.mxu0 %v1089_v30  ;;  %v1088_v29 = vld [vmem:[#allocation9 + $0x738] sm:$0xff]  ;;  %v1087_v30 = vld [vmem:[#allocation9 + $0x730] sm:$0xff] }
 0x23b   : > { %1356 = vmatprep.subr.mxu1 %v1032_v21  ;;  %1321 = vmatprep.subr.mxu0 %v1086_v31  ;;  %v1084_v21 = vld [vmem:[#allocation9 + $0x718] sm:$0xff]  ;;  %v1083_v31 = vld [vmem:[#allocation9 + $0x710] sm:$0xff] }
 0x23e   : > { %1357 = vmatpush1.xpose.msra.mxu1 %v1031_v32  ;;  %1322 = vmatpush2.xpose.msra.mxu0 %v1085_v33  ;;  %v1080_v32 = vld [vmem:[#allocation9 + $0x6f8] sm:$0xff]  ;;  %v1079_v33 = vld [vmem:[#allocation9 + $0x6f0] sm:$0xff] }
 0x23f   : > { %1358 = vmatprep.subr.mxu1 %v1028_v22  ;;  %1323 = vmatprep.subr.mxu0 %v1082_v34  ;;  %v1076_v22 = vld [vmem:[#allocation9 + $0x6d8] sm:$0xff]  ;;  %v1075_v34 = vld [vmem:[#allocation9 + $0x6d0] sm:$0xff] }
 0x242   : > { %1359 = vmatpush1.xpose.msra.mxu1 %v1027_v35  ;;  %1324 = vmatpush2.xpose.msra.mxu0 %v1081_v36  ;;  %v1072_v35 = vld [vmem:[#allocation9 + $0x6b8] sm:$0xff]  ;;  %v1071_v36 = vld [vmem:[#allocation9 + $0x6b0] sm:$0xff] }
 0x243   : > { %1360 = vmatprep.subr.mxu1 %v1024_v37  ;;  %1325 = vmatprep.subr.mxu0 %v1078_v38  ;;  %v1068_v37 = vld [vmem:[#allocation9 + $0x698] sm:$0xff]  ;;  %v1067_v38 = vld [vmem:[#allocation9 + $0x690] sm:$0xff] }
 0x246   : > { %1361 = vmatpush1.xpose.msra.mxu1 %v1023_v26  ;;  %1326 = vmatpush2.xpose.msra.mxu0 %v1077_v39  ;;  %v1064_v26 = vld [vmem:[#allocation9 + $0x678] sm:$0xff]  ;;  %v1063_v39 = vld [vmem:[#allocation9 + $0x670] sm:$0xff] }
 0x247   : > { %1362 = vmatprep.subr.mxu1 %v1020_v40  ;;  %1327 = vmatprep.subr.mxu0 %v1074_v41  ;;  %v1060_v40 = vld [vmem:[#allocation9 + $0x658] sm:$0xff]  ;;  %v1059_v41 = vld [vmem:[#allocation9 + $0x650] sm:$0xff] }
 0x24a   : > { %1363 = vmatpush1.xpose.msra.mxu1 %v1019_v42  ;;  %1328 = vmatpush2.xpose.msra.mxu0 %v1073_v43  ;;  %v1056_v42 = vld [vmem:[#allocation9 + $0x638] sm:$0xff]  ;;  %v1055_v43 = vld [vmem:[#allocation9 + $0x630] sm:$0xff] }
 0x24b   : > { %1364 = vmatprep.subr.mxu1 %v1016_v44  ;;  %1329 = vmatprep.subr.mxu0 %v1070_v45  ;;  %v1052_v44 = vld [vmem:[#allocation9 + $0x618] sm:$0xff]  ;;  %v1051_v45 = vld [vmem:[#allocation9 + $0x610] sm:$0xff] }
 0x24e   : > { %1365 = vmatpush1.xpose.msra.mxu1 %v1015_v47  ;;  %1330 = vmatpush2.xpose.msra.mxu0 %v1069_v48  ;;  %v1113_v47 = vld [vmem:[%s2111_s4] sm:$0xf] }
 0x24f   : > { %1366 = vmatprep.subr.mxu1 %v1012_v50  ;;  %1331 = vmatprep.subr.mxu0 %v1066_v51  ;;  %v1118_v50 = vrot.slane %v1113_v47, %v547_v12  ;;  %v1122_v51 = vrot.slane %v1113_v47, %v551_v13  ;;  %v1126_v12 = vrot.slane %v1113_v47, %v555_v59 }
 0x250   : > { %v1130_v13 = vrot.slane %v1113_v47, %v559_v61 }
 0x252   : > { %1367 = vmatpush1.xpose.msra.mxu1 %v1011_v52  ;;  %1332 = vmatpush2.xpose.msra.mxu0 %v1065_v53 }
 0x253   : > { %1368 = vmatprep.subr.mxu1 %v1008_v54  ;;  %1333 = vmatprep.subr.mxu0 %v1062_v55 }
 0x256   : > { %1369 = vmatpush1.xpose.msra.mxu1 %v1007_v56  ;;  %1334 = vmatpush2.xpose.msra.mxu0 %v1061_v57 }
 0x257   : > { %1370 = vmatprep.subr.mxu1 %v1004_v58  ;;  %1335 = vmatprep.subr.mxu0 %v1058_v60 }
 0x25a   : > { %1371 = vmatpush1.xpose.msra.mxu1 %v1003_v62  ;;  %1336 = vmatpush2.xpose.msra.mxu0 %v1057_v63 }
 0x25b   : > { %1372 = vmatprep.subr.mxu1 %v1000_v0  ;;  %1337 = vmatprep.subr.mxu0 %v1054_v1 }
 0x25e   : > { %1373 = vmatpush1.xpose.msra.mxu1 %v999_v2  ;;  %1338 = vmatpush2.xpose.msra.mxu0 %v1053_v3 }
 0x25f   : > { %1374 = vmatprep.subr.mxu1 %v996_v4  ;;  %1339 = vmatprep.subr.mxu0 %v1050_v5 }
 0x262   : > { %1375 = vmatpush1.xpose.msra.mxu1 %v995_v9  ;;  %1340 = vmatpush2.xpose.msra.mxu0 %v1049_v10 }
 0x263   : > { %1376 = vmatprep.subr.mxu1 %v992_v11 }
 0x265   : > { %1342 = vmatmul.mubr.f32.vlgmr.msra.gmra.mxu0 %v2042_v28  ;;  %v1096_v28 = vld [vmem:[#allocation9 + $0x778] sm:$0xff] }
 0x266   : > { %1377 = vmatpush1.xpose.msra.mxu1 %v991_v14 }
 0x267   : > { %1378 = vmatprep.subr.mxu1 %v988_v16 }
 0x26a   : > { %1379 = vmatpush1.xpose.msra.mxu1 %v987_v18 }
 0x26b   : > { %1380 = vmatprep.subr.mxu1 %v1112_v19 }
 0x26e   : > { %1381 = vmatpush2.xpose.msra.mxu1 %v1111_v15 }
 0x26f   : > { %1382 = vmatprep.subr.mxu1 %v1108_v20 }
 0x272   : > { %1383 = vmatpush2.xpose.msra.mxu1 %v1107_v23 }
 0x273   : > { %1384 = vmatprep.subr.mxu1 %v1104_v6 }
 0x276   : > { %1385 = vmatpush2.xpose.msra.mxu1 %v1103_v7 }
 0x277   : > { %1386 = vmatprep.subr.mxu1 %v1100_v46 }
 0x27a   : > { %1387 = vmatpush2.xpose.msra.mxu1 %v1099_v49 }
 0x27b   : > { %1388 = vmatprep.subr.mxu1 %v1096_v28 }
 0x27e   : > { %1389 = vmatpush2.xpose.msra.mxu1 %v1095_v24 }
 0x27f   : > { %1390 = vmatprep.subr.mxu1 %v1092_v25 }
 0x282   : > { %1391 = vmatpush2.xpose.msra.mxu1 %v1091_v27 }
 0x283   : > { %1392 = vmatprep.subr.mxu1 %v1088_v29 }
 0x286   : > { %1393 = vmatpush2.xpose.msra.mxu1 %v1087_v30 }
 0x287   : > { %1394 = vmatprep.subr.mxu1 %v1084_v21 }
 0x28a   : > { %1395 = vmatpush2.xpose.msra.mxu1 %v1083_v31 }
 0x28b   : > { %1396 = vmatprep.subr.mxu1 %v1080_v32 }
 0x28e   : > { %1397 = vmatpush2.xpose.msra.mxu1 %v1079_v33 }
 0x28f   : > { %1398 = vmatprep.subr.mxu1 %v1076_v22 }
 0x292   : > { %1399 = vmatpush2.xpose.msra.mxu1 %v1075_v34 }
 0x293   : > { %1400 = vmatprep.subr.mxu1 %v1072_v35 }
 0x296   : > { %1401 = vmatpush2.xpose.msra.mxu1 %v1071_v36 }
 0x297   : > { %1402 = vmatprep.subr.mxu1 %v1068_v37 }
 0x29a   : > { %1403 = vmatpush2.xpose.msra.mxu1 %v1067_v38 }
 0x29b   : > { %1404 = vmatprep.subr.mxu1 %v1064_v26 }
 0x29e   : > { %1405 = vmatpush2.xpose.msra.mxu1 %v1063_v39 }
 0x29f   : > { %1406 = vmatprep.subr.mxu1 %v1060_v40 }
 0x2a2   : > { %1407 = vmatpush2.xpose.msra.mxu1 %v1059_v41 }
 0x2a3   : > { %1408 = vmatprep.subr.mxu1 %v1056_v42 }
 0x2a5   : > { %v1201_v48 = vpop.f32.mrf.mxu0 }
 0x2a6   : > { %1409 = vmatpush2.xpose.msra.mxu1 %v1055_v43  ;;  %v1202_v53 = vadd.f32 %v1201_v48, %v1118_v50 }
 0x2a7   : > { %1410 = vmatprep.subr.mxu1 %v1052_v44  ;;  %v1203_v52 = vpop.f32.mrf.mxu0 }
 0x2a8   : > { %v1204_v55 = vadd.f32 %v1203_v52, %v1122_v51 }
 0x2aa   : > { %1411 = vmatpush2.xpose.msra.mxu1 %v1051_v45 }
 0x2ad   : > { %1413 = vmatmul.mubr.f32.vlgmr.msra.gmra.mxu1 %v2054_v17 }
 0x2ed   : > { %v1272_v54 = vpop.f32.mrf.mxu1 }
 0x2ee   : > { %v1273_v56 = vadd.f32 %v1272_v54, %v1202_v53 }
 0x2ef   : > { %v1274_v57 = vpop.f32.mrf.mxu1 }
 0x2f0   : > { %1419 = vst [vmem:[%s282_s13] sm:$0xff] %v1273_v56  ;;  %v1275_v17 = vadd.f32 %v1274_v57, %v1204_v55 }
 0x2f2   : > { %1420 = vst [vmem:[%s282_s13 + $0x8] sm:$0xff] %v1275_v17 }
 0x325   : > { %v1343_v58 = vpop.f32.mrf.mxu0 }
 0x326   : > { %v1344_v62 = vadd.f32 %v1343_v58, %v1126_v12 }
 0x327   : > { %v1345_v60 = vpop.f32.mrf.mxu0 }
 0x328   : > { %v1346_v0 = vadd.f32 %v1345_v60, %v1130_v13 }
 0x36d   : > { %v1414_v63 = vpop.f32.mrf.mxu1 }
 0x36e   : > { %v1415_v1 = vadd.f32 %v1414_v63, %v1344_v62 }
 0x36f   : > { %v1416_v2 = vpop.f32.mrf.mxu1 }
 0x370   : > { %1421 = vst [vmem:[%s282_s13 + $0x10] sm:$0xff] %v1415_v1  ;;  %v1417_v3 = vadd.f32 %v1416_v2, %v1346_v0 }
 0x372   : > { %1422 = vst [vmem:[%s282_s13 + $0x18] sm:$0xff] %v1417_v3 }
 0x373   : > { %1757 = shalt.err (!%p1754_p9)
}
 0x374   : > { %s1758_s27 = scalar_lea.hbm %s1436_s8, 512  ;;  %s1762_s29 = scalar_lea.hbm %s2112_s5, 1024 }
 0x375   : > { %p1759_p13 = scmp.ne.s32.totalorder %s1436_s8, %s1758_s27  ;;  %p1763_p11 = scmp.lt.s32.totalorder %s1436_s8, %s2112_s5 }
 0x376   : > { %p1764_p1 = scmp.lt.s32.totalorder %s1762_s29, %s1758_s27 }
 0x377   : > { %p1760_p8 = pnand %p1759_p13, %p2130_p6 }
 0x378   : > { %p1765_p2 = por %p1764_p1, %p1763_p11 }
 0x379   : > { %p1761_p10 = pneg %p1760_p8 }
 0x37b   : > { %p1766_p4 = pnand %p1765_p2, %p1761_p10 }
 0x37d   : > { %1769 = shalt.err (!%p1766_p4)
}
 0x37e   : > { %1573 = dma.vmem_to_hbm [thread:$0]  (%p2130_p6), %s1439_s16, 512, %s1436_s8, %s1424_s10  }
 0x37f PF: > { %s1450_s13 = sand.u32 1, %s1804_s18   ;;  %p2131_p12 = scmp.ne.s32.totalorder %s2118_s25, 0 }
 0x380   : > { %p2132_p0 = scmp.ge.s32.totalorder %s1816_s21, 2  ;;  %s1451_s15 = scalar_lea.sflag [#allocation5], %s1450_s13 }
 0x382   : > { %p1590_p5 = pnand %p2132_p0, %p2131_p12 }
 0x384   : > { %p1591_p3 = pneg %p1590_p5 }
 0x386   : > { %1799 = dma.done.wait (%p1591_p3), %s1451_s15, 512  }
 0x387   : > { %1801 = vsyncadd (%p1591_p3), %s1451_s15, 4294966784  ;;  %p20_p7 = scmp.ge.s32.totalorder %s1935_s28, 4   ;;  %s2133_s18 = smov %s1808_s19 }
 0x388   : > { %s2134_s19 = smov %s1812_s20  ;;  %s2135_s20 = smov %s1945_s6 }
 0x389   : > { %s2136_s21 = smov %s1935_s28  ;;  %22 = sbr.rel (!%p20_p7) target bundleno = 7 (0x7), region = 97 }
 0x38e   :  { %1456 = vsyncpa [#allocation4], 1 }
 0x38f   :  { %1458 = vsyncpa [#allocation4 + $0x1], 1 }
 0x390   :  { %1459 = vsyncpa [#allocation7], 1 }
 0x391   :  { %1460 = vsyncpa [#allocation10], 1 }
 0x392   :  { %1461 = vsyncpa [#allocation5], 1 }
 0x393   :  { %1463 = vsyncpa [#allocation5 + $0x1], 1 }

</bundles_post_ra>
